<compile_context>
chip_gen: v5e
topology: v5e:2x2
jax: 0.10.0
libtpu: 0.0.40
codegen_flags: <defaults>
</compile_context>

<pallas_src>
import functools

import jax
import jax.numpy as jnp
from jax.experimental import pallas as pl
from jax.experimental.pallas import tpu as pltpu


# --------------------------------------------------------------- compiler ---

@functools.lru_cache(maxsize=None)
def _vmem_limit_bytes():
    """Per-generation VMEM budget (~80% of physical): ~102 MiB v5e/v6e, ~51 MiB v7x."""
    try:
        return int(pltpu.get_tpu_info().vmem_capacity_bytes * 0.8)
    except Exception:
        return 64 * 1024 * 1024


def _compiler_params(semantics):
    return pltpu.CompilerParams(dimension_semantics=semantics,
                                vmem_limit_bytes=_vmem_limit_bytes())


# ----------------------------------------------------------------- kernels --

def degree_norm_kernel(a_ref, ndst_ref, nsrc_ref):
    """Row-tiled degree pass; sums done on the MXU (int8 A tile upcast to bf16).

    ndst = rsqrt(max(in-degree, 1)) per row tile.
    nsrc (out-degree) is accumulated across row tiles -> the grid MUST stay
    'arbitrary' (sequential); do not flip to 'parallel'.
    """
    t, n = a_ref.shape
    a = a_ref[...].astype(jnp.bfloat16)                              # int8 -> bf16
    rowsum = jnp.dot(a, jnp.ones((n, 1), jnp.bfloat16),
                     preferred_element_type=jnp.float32)             # [T, 1]
    ndst_ref[...] = jax.lax.rsqrt(jnp.maximum(rowsum, 1.0))

    i = pl.program_id(0)

    @pl.when(i == 0)
    def _():
        nsrc_ref[...] = jnp.zeros_like(nsrc_ref)

    nsrc_ref[...] += jnp.dot(jnp.ones((1, t), jnp.bfloat16), a,
                             preferred_element_type=jnp.float32)     # [1, N]

    @pl.when(i == pl.num_programs(0) - 1)
    def _():
        nsrc_ref[...] = jax.lax.rsqrt(jnp.maximum(nsrc_ref[...], 1.0))


def prescale_kernel(x_ref, nsrc_ref, o_ref):
    """conv1 input: hs0 = (nsrc * x) in bf16, computed once (not per A tile)."""
    o_ref[...] = (x_ref[...] * nsrc_ref[...]).astype(o_ref.dtype)


def gcn_layer_kernel(a_ref, hs_ref, ndst_ref, nsrc_ref, w_ref, b_ref, o_ref,
                     acc_ref, *, apply_relu):
    """K-tiled aggregate-then-project GraphConv on one (row, K) block.

    acc += A[i,k] @ hs[k]  (hs already nsrc-scaled, bf16)
    at k==last:  out = [relu](ndst_i * acc @ W + b)
                 o   = (nsrc_i * out).bf16   # next layer's pre-scaled input
    """
    k = pl.program_id(1)

    @pl.when(k == 0)
    def _():
        acc_ref[...] = jnp.zeros_like(acc_ref)

    acc_ref[...] += jnp.dot(a_ref[...].astype(jnp.bfloat16), hs_ref[...],
                            preferred_element_type=jnp.float32)

    @pl.when(k == pl.num_programs(1) - 1)
    def _():
        agg = (acc_ref[...] * ndst_ref[...]).astype(jnp.bfloat16)
        out = jnp.dot(agg, w_ref[...],
                      preferred_element_type=jnp.float32) + b_ref[...]
        if apply_relu:
            out = jnp.maximum(out, 0.0)
        # Fold the NEXT layer's src normalization + bf16 cast into the epilogue.
        o_ref[...] = (out * nsrc_ref[...]).astype(o_ref.dtype)


def gcn_aggregate_kernel(a_ref, hs_ref, ndst_ref, o_ref, acc_ref):
    """Final layer aggregation only: o[i] = ndst_i * (A[i,:] @ hs), bf16.

    The tiny conv2 projection + mean readout is a [1,F]@[F,C] epilogue done
    outside (mean-then-project == project-then-mean), keeping this pass fully
    parallel over row tiles and lane-dense on the store side.
    """
    k = pl.program_id(1)

    @pl.when(k == 0)
    def _():
        acc_ref[...] = jnp.zeros_like(acc_ref)

    acc_ref[...] += jnp.dot(a_ref[...].astype(jnp.bfloat16), hs_ref[...],
                            preferred_element_type=jnp.float32)

    @pl.when(k == pl.num_programs(1) - 1)
    def _():
        o_ref[...] = (acc_ref[...] * ndst_ref[...]).astype(o_ref.dtype)


# ----------------------------------------------------------------- wrapper --

def _degree_norms(adj_i8, tile_n):
    # TODO(synk): K-tile this pass too for extremely large N (A row blocks are
    # (tile_n, N) int8 here; fine up to N ~ tens of thousands).
    n = adj_i8.shape[0]
    ndst, nsrc_row = pl.pallas_call(
        degree_norm_kernel,
        out_shape=(jax.ShapeDtypeStruct((n, 1), jnp.float32),
                   jax.ShapeDtypeStruct((1, n), jnp.float32)),
        grid=(n // tile_n,),
        in_specs=[pl.BlockSpec((tile_n, n), lambda i: (i, 0))],
        out_specs=(pl.BlockSpec((tile_n, 1), lambda i: (i, 0)),
                   pl.BlockSpec((1, n), lambda i: (0, 0))),
        compiler_params=_compiler_params(("arbitrary",)),   # nsrc accumulates
    )(adj_i8)
    return ndst, nsrc_row.reshape(n, 1)     # cheap one-shot relayout outside


def _prescale(x, nsrc, tile_n):
    n, f = x.shape
    return pl.pallas_call(
        prescale_kernel,
        out_shape=jax.ShapeDtypeStruct((n, f), jnp.bfloat16),
        grid=(n // tile_n,),
        in_specs=[pl.BlockSpec((tile_n, f), lambda i: (i, 0)),
                  pl.BlockSpec((tile_n, 1), lambda i: (i, 0))],
        out_specs=pl.BlockSpec((tile_n, f), lambda i: (i, 0)),
        compiler_params=_compiler_params(("parallel",)),
    )(x, nsrc)


def _gcn_layer(adj_i8, hs, ndst, nsrc, w_bf16, b, tile_n, tile_k, apply_relu):
    n = adj_i8.shape[0]
    f_in, f_out = w_bf16.shape
    return pl.pallas_call(
        functools.partial(gcn_layer_kernel, apply_relu=apply_relu),
        out_shape=jax.ShapeDtypeStruct((n, f_out), jnp.bfloat16),
        grid=(n // tile_n, n // tile_k),
        in_specs=[
            pl.BlockSpec((tile_n, tile_k), lambda i, k: (i, k)),  # A (int8)
            pl.BlockSpec((tile_k, f_in), lambda i, k: (k, 0)),    # scaled h bf16
            pl.BlockSpec((tile_n, 1), lambda i, k: (i, 0)),       # ndst tile
            pl.BlockSpec((tile_n, 1), lambda i, k: (i, 0)),       # nsrc tile
            pl.BlockSpec((f_in, f_out), lambda i, k: (0, 0)),     # W (bf16)
            pl.BlockSpec((1, f_out), lambda i, k: (0, 0)),        # b
        ],
        out_specs=pl.BlockSpec((tile_n, f_out), lambda i, k: (i, 0)),
        scratch_shapes=[pltpu.VMEM((tile_n, f_in), jnp.float32)],
        compiler_params=_compiler_params(("parallel", "arbitrary")),
    )(adj_i8, hs, ndst, nsrc, w_bf16, b)


def _gcn_aggregate(adj_i8, hs, ndst, tile_n, tile_k):
    n = adj_i8.shape[0]
    f_in = hs.shape[1]
    return pl.pallas_call(
        gcn_aggregate_kernel,
        out_shape=jax.ShapeDtypeStruct((n, f_in), jnp.bfloat16),
        grid=(n // tile_n, n // tile_k),
        in_specs=[
            pl.BlockSpec((tile_n, tile_k), lambda i, k: (i, k)),
            pl.BlockSpec((tile_k, f_in), lambda i, k: (k, 0)),
            pl.BlockSpec((tile_n, 1), lambda i, k: (i, 0)),
        ],
        out_specs=pl.BlockSpec((tile_n, f_in), lambda i, k: (i, 0)),
        scratch_shapes=[pltpu.VMEM((tile_n, f_in), jnp.float32)],
        compiler_params=_compiler_params(("parallel", "arbitrary")),
    )(adj_i8, hs, ndst)


@functools.partial(jax.jit, static_argnames=("tile_n", "tile_k"))
def gcn_forward(adj, x, w1, b1, w2, b2, w3, b3, tile_n=None, tile_k=None):
    n = adj.shape[0]
    if tile_n is None:
        tile_n = min(256, n)            # big row tiles: amortize grid overhead
    if tile_k is None:
        tile_k = min(512, n)            # K tiles bound VMEM independent of N
    assert n % tile_n == 0 and n % tile_k == 0, "node count must tile evenly"
    assert tile_n == n or tile_n % 32 == 0, "tile_n: int8 sublane pack is 32"
    assert tile_k == n or tile_k % 128 == 0, "tile_k: lane width is 128"

    adj_i8 = adj.astype(jnp.int8)       # 0/1 entries: exact in int8, 1 B/elem
    ndst, nsrc = _degree_norms(adj_i8, tile_n)

    hs = _prescale(x, nsrc, tile_n)                                 # nsrc*x, bf16
    hs = _gcn_layer(adj_i8, hs, ndst, nsrc, w1.astype(jnp.bfloat16), b1,
                    tile_n, tile_k, apply_relu=True)                # conv1+relu
    hs = _gcn_layer(adj_i8, hs, ndst, nsrc, w2.astype(jnp.bfloat16), b2,
                    tile_n, tile_k, apply_relu=True)                # hidden+relu
    agg = _gcn_aggregate(adj_i8, hs, ndst, tile_n, tile_k)          # ndst*(A@hs)
    # conv2 projection + mean readout: a [1,F_in]@[F_in,C] epilogue, done in
    # XLA per review (mean-then-project == project-then-mean).
    return jnp.mean(agg.astype(jnp.float32), axis=0, keepdims=True) @ w3 + b3


# ------------------------------------------------------------ params / ref --

def init_params(key, in_feats, h_feats, num_classes):
    """Deterministic xavier-uniform-like weights, zero biases (DGL default)."""
    dims = [in_feats] + list(h_feats) + [num_classes]
    params = []
    for i in range(len(dims) - 1):
        key, sub = jax.random.split(key)
        fan_in, fan_out = dims[i], dims[i + 1]
        limit = (6.0 / (fan_in + fan_out)) ** 0.5
        w = jax.random.uniform(sub, (fan_in, fan_out), jnp.float32,
                               minval=-limit, maxval=limit)
        b = jnp.zeros((1, fan_out), jnp.float32)  # 2-D for TPU vregs
        params += [w, b]
    return params


def gcn_reference(adj, x, w1, b1, w2, b2, w3, b3):
    """Pure-JAX f32 reference (DGL GraphConv semantics, norm='both')."""
    a = adj.astype(jnp.float32)
    ndst = jax.lax.rsqrt(jnp.maximum(a.sum(axis=1, keepdims=True), 1.0))
    nsrc = jax.lax.rsqrt(jnp.maximum(a.sum(axis=0, keepdims=True), 1.0))
    ahat = ndst * a * nsrc
    h = jnp.maximum(ahat @ x @ w1 + b1, 0.0)
    h = jnp.maximum(ahat @ h @ w2 + b2, 0.0)
    h = ahat @ h @ w3 + b3
    return jnp.mean(h, axis=0, keepdims=True)


if __name__ == "__main__":
    key = jax.random.PRNGKey(0)

    # Small shapes that still exercise both grid axes (4 row tiles x 2 K tiles)
    # and lane-dense (multiple-of-128) hidden widths.
    num_nodes = 256
    tile_n, tile_k = 64, 128
    in_feats = 16
    h_feats = [128, 128]        # conv1: 16->128, one hidden conv: 128->128
    num_classes = 8             # conv2: 128->8

    k_adj, k_feat, k_par = jax.random.split(key, 3)

    # Deterministic random directed graph with self-loops (dense adjacency,
    # A[dst, src] = 1).
    adj = (jax.random.uniform(k_adj, (num_nodes, num_nodes)) < 0.1)
    adj = jnp.maximum(adj.astype(jnp.float32),
                      jnp.eye(num_nodes, dtype=jnp.float32))
    x = jax.random.normal(k_feat, (num_nodes, in_feats), jnp.float32)

    w1, b1, w2, b2, w3, b3 = init_params(k_par, in_feats, h_feats, num_classes)

    out = gcn_forward(adj, x, w1, b1, w2, b2, w3, b3,
                      tile_n=tile_n, tile_k=tile_k)
    out = jax.block_until_ready(out)

    ref = gcn_reference(adj, x, w1, b1, w2, b2, w3, b3)
    assert out.shape == (1, num_classes)
    assert bool(jnp.all(jnp.isfinite(out)))
    # bf16 matmul operands / activations -> small rounding vs f32 reference.
    assert bool(jnp.allclose(out, ref, rtol=0.1, atol=0.1))
    print("KERNEL_OK")
</pallas_src>

<mosaic_0001>
module attributes {stable_mosaic.version = 11 : i64} {
  func.func @degree_norm_kernel(%arg0: i32, %arg1: memref<64x256xi8, #tpu.memory_space<vmem>>, %arg2: memref<64x1xf32, #tpu.memory_space<vmem>>, %arg3: memref<1x256xf32, #tpu.memory_space<vmem>>) attributes {dimension_semantics = [#tpu.dimension_semantics<arbitrary>], iteration_bounds = array<i64: 4>, scalar_prefetch = 0 : i64, scratch_operands = 0 : i64, tpu.core_type = #tpu.core_type<tc>, window_params = [{transform_indices = @transform_0, window_bounds = array<i64: 64, 256>}, {transform_indices = @transform_1, window_bounds = array<i64: 64, 1>}, {pipeline_mode = #tpu.pipeline_mode<synchronous>, transform_indices = @transform_2, window_bounds = array<i64: 1, 256>}]} {
    %c0 = arith.constant 0 : index
    %c0_0 = arith.constant 0 : index
    %0 = vector.load %arg1[%c0, %c0_0] : memref<64x256xi8, #tpu.memory_space<vmem>>, vector<64x256xi8>
    %1 = arith.sitofp %0 : vector<64x256xi8> to vector<64x256xbf16>
    %cst = arith.constant 1.000000e+00 : bf16
    %2 = vector.broadcast %cst : bf16 to vector<256x1xbf16>
    %cst_1 = arith.constant dense<0.000000e+00> : vector<64x1xf32>
    %3 = tpu.matmul %1, %2, %cst_1 {dimension_numbers = #tpu.dot_dimension_numbers<[1], [0], [0], [1], [0, 0, 1, 1], [], []>} : vector<64x256xbf16>, vector<256x1xbf16>, vector<64x1xf32> -> vector<64x1xf32>
    %cst_2 = arith.constant 1.000000e+00 : f32
    %4 = vector.broadcast %cst_2 : f32 to vector<64x1xf32>
    %5 = arith.maximumf %3, %4 : vector<64x1xf32>
    %6 = math.rsqrt %5 : vector<64x1xf32>
    %c0_3 = arith.constant 0 : index
    %c0_4 = arith.constant 0 : index
    %7 = vector.load %arg2[%c0_3, %c0_4] : memref<64x1xf32, #tpu.memory_space<vmem>>, vector<64x1xf32>
    tpu.vector_store %arg2[%c0_3, %c0_4], %6 {strides = array<i32>} : memref<64x1xf32, #tpu.memory_space<vmem>>, vector<64x1xf32>,
    %c0_i32 = arith.constant 0 : i32
    %8 = arith.cmpi eq, %arg0, %c0_i32 : i32
    %9 = arith.extui %8 : i1 to i32
    %c0_i32_5 = arith.constant 0 : i32
    %10 = arith.cmpi ne, %9, %c0_i32_5 : i32
    scf.if %10 {
      %cst_13 = arith.constant 0.000000e+00 : f32
      %19 = vector.broadcast %cst_13 : f32 to vector<1x256xf32>
      %c0_14 = arith.constant 0 : index
      %c0_15 = arith.constant 0 : index
      %20 = vector.load %arg3[%c0_14, %c0_15] : memref<1x256xf32, #tpu.memory_space<vmem>>, vector<1x256xf32>
      tpu.vector_store %arg3[%c0_14, %c0_15], %19 {strides = array<i32>} : memref<1x256xf32, #tpu.memory_space<vmem>>, vector<1x256xf32>,
    } else {
    }
    %c0_6 = arith.constant 0 : index
    %c0_7 = arith.constant 0 : index
    %11 = vector.load %arg3[%c0_6, %c0_7] : memref<1x256xf32, #tpu.memory_space<vmem>>, vector<1x256xf32>
    %cst_8 = arith.constant 1.000000e+00 : bf16
    %12 = vector.broadcast %cst_8 : bf16 to vector<1x64xbf16>
    %cst_9 = arith.constant dense<0.000000e+00> : vector<1x256xf32>
    %13 = tpu.matmul %12, %1, %cst_9 {dimension_numbers = #tpu.dot_dimension_numbers<[1], [0], [0], [1], [0, 0, 1, 1], [], []>} : vector<1x64xbf16>, vector<64x256xbf16>, vector<1x256xf32> -> vector<1x256xf32>
    %14 = arith.addf %11, %13 : vector<1x256xf32>
    %c0_10 = arith.constant 0 : index
    %c0_11 = arith.constant 0 : index
    %15 = vector.load %arg3[%c0_10, %c0_11] : memref<1x256xf32, #tpu.memory_space<vmem>>, vector<1x256xf32>
    tpu.vector_store %arg3[%c0_10, %c0_11], %14 {strides = array<i32>} : memref<1x256xf32, #tpu.memory_space<vmem>>, vector<1x256xf32>,
    %c3_i32 = arith.constant 3 : i32
    %16 = arith.cmpi eq, %arg0, %c3_i32 : i32
    %17 = arith.extui %16 : i1 to i32
    %c0_i32_12 = arith.constant 0 : i32
    %18 = arith.cmpi ne, %17, %c0_i32_12 : i32
    scf.if %18 {
      %c0_13 = arith.constant 0 : index
      %c0_14 = arith.constant 0 : index
      %19 = vector.load %arg3[%c0_13, %c0_14] : memref<1x256xf32, #tpu.memory_space<vmem>>, vector<1x256xf32>
      %cst_15 = arith.constant 1.000000e+00 : f32
      %20 = vector.broadcast %cst_15 : f32 to vector<1x256xf32>
      %21 = arith.maximumf %19, %20 : vector<1x256xf32>
      %22 = math.rsqrt %21 : vector<1x256xf32>
      %c0_16 = arith.constant 0 : index
      %c0_17 = arith.constant 0 : index
      %23 = vector.load %arg3[%c0_16, %c0_17] : memref<1x256xf32, #tpu.memory_space<vmem>>, vector<1x256xf32>
      tpu.vector_store %arg3[%c0_16, %c0_17], %22 {strides = array<i32>} : memref<1x256xf32, #tpu.memory_space<vmem>>, vector<1x256xf32>,
    } else {
    }
    return
  }
  func.func @transform_0(%arg0: i32) -> (i32, i32) {
    %c0_i32 = arith.constant 0 : i32
    %c0_i32_0 = arith.constant 0 : i32
    return %arg0, %c0_i32 : i32, i32
  }
  func.func @transform_1(%arg0: i32) -> (i32, i32) {
    %c0_i32 = arith.constant 0 : i32
    %c0_i32_0 = arith.constant 0 : i32
    return %arg0, %c0_i32 : i32, i32
  }
  func.func @transform_2(%arg0: i32) -> (i32, i32) {
    %c0_i32 = arith.constant 0 : i32
    %c0_i32_0 = arith.constant 0 : i32
    %c0_i32_1 = arith.constant 0 : i32
    return %c0_i32, %c0_i32_0 : i32, i32
  }
}

module attributes {stable_mosaic.version = 11 : i64} {
  func.func @prescale_kernel(%arg0: i32, %arg1: memref<64x16xf32, #tpu.memory_space<vmem>>, %arg2: memref<64x1xf32, #tpu.memory_space<vmem>>, %arg3: memref<64x16xbf16, #tpu.memory_space<vmem>>) attributes {dimension_semantics = [#tpu.dimension_semantics<parallel>], iteration_bounds = array<i64: 4>, scalar_prefetch = 0 : i64, scratch_operands = 0 : i64, tpu.core_type = #tpu.core_type<tc>, window_params = [{transform_indices = @transform_0, window_bounds = array<i64: 64, 16>}, {transform_indices = @transform_1, window_bounds = array<i64: 64, 1>}, {transform_indices = @transform_2, window_bounds = array<i64: 64, 16>}]} {
    %c0 = arith.constant 0 : index
    %c0_0 = arith.constant 0 : index
    %0 = vector.load %arg1[%c0, %c0_0] : memref<64x16xf32, #tpu.memory_space<vmem>>, vector<64x16xf32>
    %c0_1 = arith.constant 0 : index
    %c0_2 = arith.constant 0 : index
    %1 = vector.load %arg2[%c0_1, %c0_2] : memref<64x1xf32, #tpu.memory_space<vmem>>, vector<64x1xf32>
    %2 = vector.broadcast %1 : vector<64x1xf32> to vector<64x16xf32>
    %3 = arith.mulf %0, %2 : vector<64x16xf32>
    %4 = arith.truncf %3 : vector<64x16xf32> to vector<64x16xbf16>
    %c0_3 = arith.constant 0 : index
    %c0_4 = arith.constant 0 : index
    %5 = vector.load %arg3[%c0_3, %c0_4] : memref<64x16xbf16, #tpu.memory_space<vmem>>, vector<64x16xbf16>
    tpu.vector_store %arg3[%c0_3, %c0_4], %4 {strides = array<i32>} : memref<64x16xbf16, #tpu.memory_space<vmem>>, vector<64x16xbf16>,
    return
  }
  func.func @transform_0(%arg0: i32) -> (i32, i32) {
    %c0_i32 = arith.constant 0 : i32
    %c0_i32_0 = arith.constant 0 : i32
    return %arg0, %c0_i32 : i32, i32
  }
  func.func @transform_1(%arg0: i32) -> (i32, i32) {
    %c0_i32 = arith.constant 0 : i32
    %c0_i32_0 = arith.constant 0 : i32
    return %arg0, %c0_i32 : i32, i32
  }
  func.func @transform_2(%arg0: i32) -> (i32, i32) {
    %c0_i32 = arith.constant 0 : i32
    %c0_i32_0 = arith.constant 0 : i32
    return %arg0, %c0_i32 : i32, i32
  }
}

module attributes {stable_mosaic.version = 11 : i64} {
  func.func @gcn_layer_kernel(%arg0: i32, %arg1: i32, %arg2: memref<64x128xi8, #tpu.memory_space<vmem>>, %arg3: memref<128x16xbf16, #tpu.memory_space<vmem>>, %arg4: memref<64x1xf32, #tpu.memory_space<vmem>>, %arg5: memref<64x1xf32, #tpu.memory_space<vmem>>, %arg6: memref<16x128xbf16, #tpu.memory_space<vmem>>, %arg7: memref<1x128xf32, #tpu.memory_space<vmem>>, %arg8: memref<64x128xbf16, #tpu.memory_space<vmem>>, %arg9: memref<64x16xf32, #tpu.memory_space<vmem>>) attributes {dimension_semantics = [#tpu.dimension_semantics<parallel>, #tpu.dimension_semantics<arbitrary>], iteration_bounds = array<i64: 4, 2>, scalar_prefetch = 0 : i64, scratch_operands = 1 : i64, tpu.core_type = #tpu.core_type<tc>, window_params = [{transform_indices = @transform_0, window_bounds = array<i64: 64, 128>}, {transform_indices = @transform_1, window_bounds = array<i64: 128, 16>}, {transform_indices = @transform_2, window_bounds = array<i64: 64, 1>}, {transform_indices = @transform_3, window_bounds = array<i64: 64, 1>}, {pipeline_mode = #tpu.pipeline_mode<synchronous>, transform_indices = @transform_4, window_bounds = array<i64: 16, 128>}, {pipeline_mode = #tpu.pipeline_mode<synchronous>, transform_indices = @transform_5, window_bounds = array<i64: 1, 128>}, {transform_indices = @transform_6, window_bounds = array<i64: 64, 128>}]} {
    %c0_i32 = arith.constant 0 : i32
    %0 = arith.cmpi eq, %arg1, %c0_i32 : i32
    %1 = arith.extui %0 : i1 to i32
    %c0_i32_0 = arith.constant 0 : i32
    %2 = arith.cmpi ne, %1, %c0_i32_0 : i32
    scf.if %2 {
      %cst_9 = arith.constant 0.000000e+00 : f32
      %13 = vector.broadcast %cst_9 : f32 to vector<64x16xf32>
      %c0_10 = arith.constant 0 : index
      %c0_11 = arith.constant 0 : index
      %14 = vector.load %arg9[%c0_10, %c0_11] : memref<64x16xf32, #tpu.memory_space<vmem>>, vector<64x16xf32>
      tpu.vector_store %arg9[%c0_10, %c0_11], %13 {strides = array<i32>} : memref<64x16xf32, #tpu.memory_space<vmem>>, vector<64x16xf32>,
    } else {
    }
    %c0 = arith.constant 0 : index
    %c0_1 = arith.constant 0 : index
    %3 = vector.load %arg9[%c0, %c0_1] : memref<64x16xf32, #tpu.memory_space<vmem>>, vector<64x16xf32>
    %c0_2 = arith.constant 0 : index
    %c0_3 = arith.constant 0 : index
    %4 = vector.load %arg2[%c0_2, %c0_3] : memref<64x128xi8, #tpu.memory_space<vmem>>, vector<64x128xi8>
    %5 = arith.sitofp %4 : vector<64x128xi8> to vector<64x128xbf16>
    %c0_4 = arith.constant 0 : index
    %c0_5 = arith.constant 0 : index
    %6 = vector.load %arg3[%c0_4, %c0_5] : memref<128x16xbf16, #tpu.memory_space<vmem>>, vector<128x16xbf16>
    %cst = arith.constant dense<0.000000e+00> : vector<64x16xf32>
    %7 = tpu.matmul %5, %6, %cst {dimension_numbers = #tpu.dot_dimension_numbers<[1], [0], [0], [1], [0, 0, 1, 1], [], []>} : vector<64x128xbf16>, vector<128x16xbf16>, vector<64x16xf32> -> vector<64x16xf32>
    %8 = arith.addf %3, %7 : vector<64x16xf32>
    %c0_6 = arith.constant 0 : index
    %c0_7 = arith.constant 0 : index
    %9 = vector.load %arg9[%c0_6, %c0_7] : memref<64x16xf32, #tpu.memory_space<vmem>>, vector<64x16xf32>
    tpu.vector_store %arg9[%c0_6, %c0_7], %8 {strides = array<i32>} : memref<64x16xf32, #tpu.memory_space<vmem>>, vector<64x16xf32>,
    %c1_i32 = arith.constant 1 : i32
    %10 = arith.cmpi eq, %arg1, %c1_i32 : i32
    %11 = arith.extui %10 : i1 to i32
    %c0_i32_8 = arith.constant 0 : i32
    %12 = arith.cmpi ne, %11, %c0_i32_8 : i32
    scf.if %12 {
      %c0_9 = arith.constant 0 : index
      %c0_10 = arith.constant 0 : index
      %13 = vector.load %arg9[%c0_9, %c0_10] : memref<64x16xf32, #tpu.memory_space<vmem>>, vector<64x16xf32>
      %c0_11 = arith.constant 0 : index
      %c0_12 = arith.constant 0 : index
      %14 = vector.load %arg4[%c0_11, %c0_12] : memref<64x1xf32, #tpu.memory_space<vmem>>, vector<64x1xf32>
      %15 = vector.broadcast %14 : vector<64x1xf32> to vector<64x16xf32>
      %16 = arith.mulf %13, %15 : vector<64x16xf32>
      %17 = arith.truncf %16 : vector<64x16xf32> to vector<64x16xbf16>
      %c0_13 = arith.constant 0 : index
      %c0_14 = arith.constant 0 : index
      %18 = vector.load %arg6[%c0_13, %c0_14] : memref<16x128xbf16, #tpu.memory_space<vmem>>, vector<16x128xbf16>
      %cst_15 = arith.constant dense<0.000000e+00> : vector<64x128xf32>
      %19 = tpu.matmul %17, %18, %cst_15 {dimension_numbers = #tpu.dot_dimension_numbers<[1], [0], [0], [1], [0, 0, 1, 1], [], []>} : vector<64x16xbf16>, vector<16x128xbf16>, vector<64x128xf32> -> vector<64x128xf32>
      %c0_16 = arith.constant 0 : index
      %c0_17 = arith.constant 0 : index
      %20 = vector.load %arg7[%c0_16, %c0_17] : memref<1x128xf32, #tpu.memory_space<vmem>>, vector<1x128xf32>
      %21 = vector.broadcast %20 : vector<1x128xf32> to vector<64x128xf32>
      %22 = arith.addf %19, %21 : vector<64x128xf32>
      %cst_18 = arith.constant 0.000000e+00 : f32
      %23 = vector.broadcast %cst_18 : f32 to vector<64x128xf32>
      %24 = arith.maximumf %22, %23 : vector<64x128xf32>
      %c0_19 = arith.constant 0 : index
      %c0_20 = arith.constant 0 : index
      %25 = vector.load %arg5[%c0_19, %c0_20] : memref<64x1xf32, #tpu.memory_space<vmem>>, vector<64x1xf32>
      %26 = vector.broadcast %25 : vector<64x1xf32> to vector<64x128xf32>
      %27 = arith.mulf %24, %26 : vector<64x128xf32>
      %28 = arith.truncf %27 : vector<64x128xf32> to vector<64x128xbf16>
      %c0_21 = arith.constant 0 : index
      %c0_22 = arith.constant 0 : index
      %29 = vector.load %arg8[%c0_21, %c0_22] : memref<64x128xbf16, #tpu.memory_space<vmem>>, vector<64x128xbf16>
      tpu.vector_store %arg8[%c0_21, %c0_22], %28 {strides = array<i32>} : memref<64x128xbf16, #tpu.memory_space<vmem>>, vector<64x128xbf16>,
    } else {
    }
    return
  }
  func.func @transform_0(%arg0: i32, %arg1: i32) -> (i32, i32) {
    %c0_i32 = arith.constant 0 : i32
    return %arg0, %arg1 : i32, i32
  }
  func.func @transform_1(%arg0: i32, %arg1: i32) -> (i32, i32) {
    %c0_i32 = arith.constant 0 : i32
    %c0_i32_0 = arith.constant 0 : i32
    return %arg1, %c0_i32 : i32, i32
  }
  func.func @transform_2(%arg0: i32, %arg1: i32) -> (i32, i32) {
    %c0_i32 = arith.constant 0 : i32
    %c0_i32_0 = arith.constant 0 : i32
    return %arg0, %c0_i32 : i32, i32
  }
  func.func @transform_3(%arg0: i32, %arg1: i32) -> (i32, i32) {
    %c0_i32 = arith.constant 0 : i32
    %c0_i32_0 = arith.constant 0 : i32
    return %arg0, %c0_i32 : i32, i32
  }
  func.func @transform_4(%arg0: i32, %arg1: i32) -> (i32, i32) {
    %c0_i32 = arith.constant 0 : i32
    %c0_i32_0 = arith.constant 0 : i32
    %c0_i32_1 = arith.constant 0 : i32
    return %c0_i32, %c0_i32_0 : i32, i32
  }
  func.func @transform_5(%arg0: i32, %arg1: i32) -> (i32, i32) {
    %c0_i32 = arith.constant 0 : i32
    %c0_i32_0 = arith.constant 0 : i32
    %c0_i32_1 = arith.constant 0 : i32
    return %c0_i32, %c0_i32_0 : i32, i32
  }
  func.func @transform_6(%arg0: i32, %arg1: i32) -> (i32, i32) {
    %c0_i32 = arith.constant 0 : i32
    %c0_i32_0 = arith.constant 0 : i32
    return %arg0, %c0_i32 : i32, i32
  }
}

module attributes {stable_mosaic.version = 11 : i64} {
  func.func @gcn_layer_kernel(%arg0: i32, %arg1: i32, %arg2: memref<64x128xi8, #tpu.memory_space<vmem>>, %arg3: memref<128x128xbf16, #tpu.memory_space<vmem>>, %arg4: memref<64x1xf32, #tpu.memory_space<vmem>>, %arg5: memref<64x1xf32, #tpu.memory_space<vmem>>, %arg6: memref<128x128xbf16, #tpu.memory_space<vmem>>, %arg7: memref<1x128xf32, #tpu.memory_space<vmem>>, %arg8: memref<64x128xbf16, #tpu.memory_space<vmem>>, %arg9: memref<64x128xf32, #tpu.memory_space<vmem>>) attributes {dimension_semantics = [#tpu.dimension_semantics<parallel>, #tpu.dimension_semantics<arbitrary>], iteration_bounds = array<i64: 4, 2>, scalar_prefetch = 0 : i64, scratch_operands = 1 : i64, tpu.core_type = #tpu.core_type<tc>, window_params = [{transform_indices = @transform_0, window_bounds = array<i64: 64, 128>}, {transform_indices = @transform_1, window_bounds = array<i64: 128, 128>}, {transform_indices = @transform_2, window_bounds = array<i64: 64, 1>}, {transform_indices = @transform_3, window_bounds = array<i64: 64, 1>}, {pipeline_mode = #tpu.pipeline_mode<synchronous>, transform_indices = @transform_4, window_bounds = array<i64: 128, 128>}, {pipeline_mode = #tpu.pipeline_mode<synchronous>, transform_indices = @transform_5, window_bounds = array<i64: 1, 128>}, {transform_indices = @transform_6, window_bounds = array<i64: 64, 128>}]} {
    %c0_i32 = arith.constant 0 : i32
    %0 = arith.cmpi eq, %arg1, %c0_i32 : i32
    %1 = arith.extui %0 : i1 to i32
    %c0_i32_0 = arith.constant 0 : i32
    %2 = arith.cmpi ne, %1, %c0_i32_0 : i32
    scf.if %2 {
      %cst_9 = arith.constant 0.000000e+00 : f32
      %13 = vector.broadcast %cst_9 : f32 to vector<64x128xf32>
      %c0_10 = arith.constant 0 : index
      %c0_11 = arith.constant 0 : index
      %14 = vector.load %arg9[%c0_10, %c0_11] : memref<64x128xf32, #tpu.memory_space<vmem>>, vector<64x128xf32>
      tpu.vector_store %arg9[%c0_10, %c0_11], %13 {strides = array<i32>} : memref<64x128xf32, #tpu.memory_space<vmem>>, vector<64x128xf32>,
    } else {
    }
    %c0 = arith.constant 0 : index
    %c0_1 = arith.constant 0 : index
    %3 = vector.load %arg9[%c0, %c0_1] : memref<64x128xf32, #tpu.memory_space<vmem>>, vector<64x128xf32>
    %c0_2 = arith.constant 0 : index
    %c0_3 = arith.constant 0 : index
    %4 = vector.load %arg2[%c0_2, %c0_3] : memref<64x128xi8, #tpu.memory_space<vmem>>, vector<64x128xi8>
    %5 = arith.sitofp %4 : vector<64x128xi8> to vector<64x128xbf16>
    %c0_4 = arith.constant 0 : index
    %c0_5 = arith.constant 0 : index
    %6 = vector.load %arg3[%c0_4, %c0_5] : memref<128x128xbf16, #tpu.memory_space<vmem>>, vector<128x128xbf16>
    %cst = arith.constant dense<0.000000e+00> : vector<64x128xf32>
    %7 = tpu.matmul %5, %6, %cst {dimension_numbers = #tpu.dot_dimension_numbers<[1], [0], [0], [1], [0, 0, 1, 1], [], []>} : vector<64x128xbf16>, vector<128x128xbf16>, vector<64x128xf32> -> vector<64x128xf32>
    %8 = arith.addf %3, %7 : vector<64x128xf32>
    %c0_6 = arith.constant 0 : index
    %c0_7 = arith.constant 0 : index
    %9 = vector.load %arg9[%c0_6, %c0_7] : memref<64x128xf32, #tpu.memory_space<vmem>>, vector<64x128xf32>
    tpu.vector_store %arg9[%c0_6, %c0_7], %8 {strides = array<i32>} : memref<64x128xf32, #tpu.memory_space<vmem>>, vector<64x128xf32>,
    %c1_i32 = arith.constant 1 : i32
    %10 = arith.cmpi eq, %arg1, %c1_i32 : i32
    %11 = arith.extui %10 : i1 to i32
    %c0_i32_8 = arith.constant 0 : i32
    %12 = arith.cmpi ne, %11, %c0_i32_8 : i32
    scf.if %12 {
      %c0_9 = arith.constant 0 : index
      %c0_10 = arith.constant 0 : index
      %13 = vector.load %arg9[%c0_9, %c0_10] : memref<64x128xf32, #tpu.memory_space<vmem>>, vector<64x128xf32>
      %c0_11 = arith.constant 0 : index
      %c0_12 = arith.constant 0 : index
      %14 = vector.load %arg4[%c0_11, %c0_12] : memref<64x1xf32, #tpu.memory_space<vmem>>, vector<64x1xf32>
      %15 = vector.broadcast %14 : vector<64x1xf32> to vector<64x128xf32>
      %16 = arith.mulf %13, %15 : vector<64x128xf32>
      %17 = arith.truncf %16 : vector<64x128xf32> to vector<64x128xbf16>
      %c0_13 = arith.constant 0 : index
      %c0_14 = arith.constant 0 : index
      %18 = vector.load %arg6[%c0_13, %c0_14] : memref<128x128xbf16, #tpu.memory_space<vmem>>, vector<128x128xbf16>
      %cst_15 = arith.constant dense<0.000000e+00> : vector<64x128xf32>
      %19 = tpu.matmul %17, %18, %cst_15 {dimension_numbers = #tpu.dot_dimension_numbers<[1], [0], [0], [1], [0, 0, 1, 1], [], []>} : vector<64x128xbf16>, vector<128x128xbf16>, vector<64x128xf32> -> vector<64x128xf32>
      %c0_16 = arith.constant 0 : index
      %c0_17 = arith.constant 0 : index
      %20 = vector.load %arg7[%c0_16, %c0_17] : memref<1x128xf32, #tpu.memory_space<vmem>>, vector<1x128xf32>
      %21 = vector.broadcast %20 : vector<1x128xf32> to vector<64x128xf32>
      %22 = arith.addf %19, %21 : vector<64x128xf32>
      %cst_18 = arith.constant 0.000000e+00 : f32
      %23 = vector.broadcast %cst_18 : f32 to vector<64x128xf32>
      %24 = arith.maximumf %22, %23 : vector<64x128xf32>
      %c0_19 = arith.constant 0 : index
      %c0_20 = arith.constant 0 : index
      %25 = vector.load %arg5[%c0_19, %c0_20] : memref<64x1xf32, #tpu.memory_space<vmem>>, vector<64x1xf32>
      %26 = vector.broadcast %25 : vector<64x1xf32> to vector<64x128xf32>
      %27 = arith.mulf %24, %26 : vector<64x128xf32>
      %28 = arith.truncf %27 : vector<64x128xf32> to vector<64x128xbf16>
      %c0_21 = arith.constant 0 : index
      %c0_22 = arith.constant 0 : index
      %29 = vector.load %arg8[%c0_21, %c0_22] : memref<64x128xbf16, #tpu.memory_space<vmem>>, vector<64x128xbf16>
      tpu.vector_store %arg8[%c0_21, %c0_22], %28 {strides = array<i32>} : memref<64x128xbf16, #tpu.memory_space<vmem>>, vector<64x128xbf16>,
    } else {
    }
    return
  }
  func.func @transform_0(%arg0: i32, %arg1: i32) -> (i32, i32) {
    %c0_i32 = arith.constant 0 : i32
    return %arg0, %arg1 : i32, i32
  }
  func.func @transform_1(%arg0: i32, %arg1: i32) -> (i32, i32) {
    %c0_i32 = arith.constant 0 : i32
    %c0_i32_0 = arith.constant 0 : i32
    return %arg1, %c0_i32 : i32, i32
  }
  func.func @transform_2(%arg0: i32, %arg1: i32) -> (i32, i32) {
    %c0_i32 = arith.constant 0 : i32
    %c0_i32_0 = arith.constant 0 : i32
    return %arg0, %c0_i32 : i32, i32
  }
  func.func @transform_3(%arg0: i32, %arg1: i32) -> (i32, i32) {
    %c0_i32 = arith.constant 0 : i32
    %c0_i32_0 = arith.constant 0 : i32
    return %arg0, %c0_i32 : i32, i32
  }
  func.func @transform_4(%arg0: i32, %arg1: i32) -> (i32, i32) {
    %c0_i32 = arith.constant 0 : i32
    %c0_i32_0 = arith.constant 0 : i32
    %c0_i32_1 = arith.constant 0 : i32
    return %c0_i32, %c0_i32_0 : i32, i32
  }
  func.func @transform_5(%arg0: i32, %arg1: i32) -> (i32, i32) {
    %c0_i32 = arith.constant 0 : i32
    %c0_i32_0 = arith.constant 0 : i32
    %c0_i32_1 = arith.constant 0 : i32
    return %c0_i32, %c0_i32_0 : i32, i32
  }
  func.func @transform_6(%arg0: i32, %arg1: i32) -> (i32, i32) {
    %c0_i32 = arith.constant 0 : i32
    %c0_i32_0 = arith.constant 0 : i32
    return %arg0, %c0_i32 : i32, i32
  }
}

module attributes {stable_mosaic.version = 11 : i64} {
  func.func @gcn_aggregate_kernel(%arg0: i32, %arg1: i32, %arg2: memref<64x128xi8, #tpu.memory_space<vmem>>, %arg3: memref<128x128xbf16, #tpu.memory_space<vmem>>, %arg4: memref<64x1xf32, #tpu.memory_space<vmem>>, %arg5: memref<64x128xbf16, #tpu.memory_space<vmem>>, %arg6: memref<64x128xf32, #tpu.memory_space<vmem>>) attributes {dimension_semantics = [#tpu.dimension_semantics<parallel>, #tpu.dimension_semantics<arbitrary>], iteration_bounds = array<i64: 4, 2>, scalar_prefetch = 0 : i64, scratch_operands = 1 : i64, tpu.core_type = #tpu.core_type<tc>, window_params = [{transform_indices = @transform_0, window_bounds = array<i64: 64, 128>}, {transform_indices = @transform_1, window_bounds = array<i64: 128, 128>}, {transform_indices = @transform_2, window_bounds = array<i64: 64, 1>}, {transform_indices = @transform_3, window_bounds = array<i64: 64, 128>}]} {
    %c0_i32 = arith.constant 0 : i32
    %0 = arith.cmpi eq, %arg1, %c0_i32 : i32
    %1 = arith.extui %0 : i1 to i32
    %c0_i32_0 = arith.constant 0 : i32
    %2 = arith.cmpi ne, %1, %c0_i32_0 : i32
    scf.if %2 {
      %cst_9 = arith.constant 0.000000e+00 : f32
      %13 = vector.broadcast %cst_9 : f32 to vector<64x128xf32>
      %c0_10 = arith.constant 0 : index
      %c0_11 = arith.constant 0 : index
      %14 = vector.load %arg6[%c0_10, %c0_11] : memref<64x128xf32, #tpu.memory_space<vmem>>, vector<64x128xf32>
      tpu.vector_store %arg6[%c0_10, %c0_11], %13 {strides = array<i32>} : memref<64x128xf32, #tpu.memory_space<vmem>>, vector<64x128xf32>,
    } else {
    }
    %c0 = arith.constant 0 : index
    %c0_1 = arith.constant 0 : index
    %3 = vector.load %arg6[%c0, %c0_1] : memref<64x128xf32, #tpu.memory_space<vmem>>, vector<64x128xf32>
    %c0_2 = arith.constant 0 : index
    %c0_3 = arith.constant 0 : index
    %4 = vector.load %arg2[%c0_2, %c0_3] : memref<64x128xi8, #tpu.memory_space<vmem>>, vector<64x128xi8>
    %5 = arith.sitofp %4 : vector<64x128xi8> to vector<64x128xbf16>
    %c0_4 = arith.constant 0 : index
    %c0_5 = arith.constant 0 : index
    %6 = vector.load %arg3[%c0_4, %c0_5] : memref<128x128xbf16, #tpu.memory_space<vmem>>, vector<128x128xbf16>
    %cst = arith.constant dense<0.000000e+00> : vector<64x128xf32>
    %7 = tpu.matmul %5, %6, %cst {dimension_numbers = #tpu.dot_dimension_numbers<[1], [0], [0], [1], [0, 0, 1, 1], [], []>} : vector<64x128xbf16>, vector<128x128xbf16>, vector<64x128xf32> -> vector<64x128xf32>
    %8 = arith.addf %3, %7 : vector<64x128xf32>
    %c0_6 = arith.constant 0 : index
    %c0_7 = arith.constant 0 : index
    %9 = vector.load %arg6[%c0_6, %c0_7] : memref<64x128xf32, #tpu.memory_space<vmem>>, vector<64x128xf32>
    tpu.vector_store %arg6[%c0_6, %c0_7], %8 {strides = array<i32>} : memref<64x128xf32, #tpu.memory_space<vmem>>, vector<64x128xf32>,
    %c1_i32 = arith.constant 1 : i32
    %10 = arith.cmpi eq, %arg1, %c1_i32 : i32
    %11 = arith.extui %10 : i1 to i32
    %c0_i32_8 = arith.constant 0 : i32
    %12 = arith.cmpi ne, %11, %c0_i32_8 : i32
    scf.if %12 {
      %c0_9 = arith.constant 0 : index
      %c0_10 = arith.constant 0 : index
      %13 = vector.load %arg6[%c0_9, %c0_10] : memref<64x128xf32, #tpu.memory_space<vmem>>, vector<64x128xf32>
      %c0_11 = arith.constant 0 : index
      %c0_12 = arith.constant 0 : index
      %14 = vector.load %arg4[%c0_11, %c0_12] : memref<64x1xf32, #tpu.memory_space<vmem>>, vector<64x1xf32>
      %15 = vector.broadcast %14 : vector<64x1xf32> to vector<64x128xf32>
      %16 = arith.mulf %13, %15 : vector<64x128xf32>
      %17 = arith.truncf %16 : vector<64x128xf32> to vector<64x128xbf16>
      %c0_13 = arith.constant 0 : index
      %c0_14 = arith.constant 0 : index
      %18 = vector.load %arg5[%c0_13, %c0_14] : memref<64x128xbf16, #tpu.memory_space<vmem>>, vector<64x128xbf16>
      tpu.vector_store %arg5[%c0_13, %c0_14], %17 {strides = array<i32>} : memref<64x128xbf16, #tpu.memory_space<vmem>>, vector<64x128xbf16>,
    } else {
    }
    return
  }
  func.func @transform_0(%arg0: i32, %arg1: i32) -> (i32, i32) {
    %c0_i32 = arith.constant 0 : i32
    return %arg0, %arg1 : i32, i32
  }
  func.func @transform_1(%arg0: i32, %arg1: i32) -> (i32, i32) {
    %c0_i32 = arith.constant 0 : i32
    %c0_i32_0 = arith.constant 0 : i32
    return %arg1, %c0_i32 : i32, i32
  }
  func.func @transform_2(%arg0: i32, %arg1: i32) -> (i32, i32) {
    %c0_i32 = arith.constant 0 : i32
    %c0_i32_0 = arith.constant 0 : i32
    return %arg0, %c0_i32 : i32, i32
  }
  func.func @transform_3(%arg0: i32, %arg1: i32) -> (i32, i32) {
    %c0_i32 = arith.constant 0 : i32
    %c0_i32_0 = arith.constant 0 : i32
    return %arg0, %c0_i32 : i32, i32
  }
}

</mosaic_0001>

<bundles_post_ra>
// kernel: gcn_forward.6
= control target key start
LH: loop header
LB: loop body
LE: loop exit
PB: predicated region body
PF: predicated region fallthrough
CT: control target
= control target key end

     0   :  { %s367_s9 = smov 0   ;;  %s415_s0 = inlined_call_operand.vmem [shape: f32[256,16], index: 0, kind: input, shape index: {}]   ;;  %s416_s1 = inlined_call_operand.vmem [shape: f32[256,1], index: 1, kind: input, shape index: {}]   ;;  %s417_s2 = inlined_call_operand.vmem [shape: bf16[256,16], index: 2, kind: output, shape index: {}]  }
   0x1 LB: > { %s318_s10 = sadd.s32 4294967295, %s349_s9   ;;  %p322_p0 = scmp.ge.s32.totalorder %s349_s9, 1  ;;  %s349_s9 = sphi %s367_s9, %s12_s9  }
   0x2   : > { %p124_p1 = scmp.lt.s32.totalorder %s349_s9, 5 }
   0x4   : > { %p125_p2 = pnand %p322_p0, %p124_p1 }
   0x5   : > { %s323_s11 = sshll.u32 (!%p125_p2), %s318_s10, 3 }
   0x6   : > { %128 = sbr.rel (%p125_p2) target bundleno = 152 (0x98), region = 28  ;;  %p152_p3 = scmp.lt.s32.totalorder (!%p125_p2), %s323_s11, 31 }
   0xb   : > { %v351_v0 = vmov 0   ;;  %s419_s11 = smov (!%p152_p3, %s323_s11), 31  ;;  %vm241_vm0 = vcmask 125952  }
   0xc   : > { %341 = vset.pattern.permute.xlu1 %v351_v0  ;;  %340 = vset.pattern.permute.xlu0 %v351_v0  ;;  %s324_s12 = sshll.u32 %s419_s11, 3  ;;  %s328_s19 = sshll.u32 %s419_s11, 2 }
   0xd   : > { %342 = vset.pattern.permute.xlu2 %v351_v0  ;;  %s161_s15 = scalar_lea.vmem %s416_s1, %s324_s12  ;;  %s381_s18 = scalar_lea.vmem %s415_s0, %s324_s12 }
   0xe   : > { %v179_v1 = vld [vmem:[%s161_s15 + $0x10] sm:$0xff]  ;;  %v177_v2 = vld [vmem:[%s161_s15] sm:$0xff]  ;;  %v180_v4 = vld [vmem:[%s161_s15 + $0x18] sm:$0xff]  ;;  %s387_s22 = scalar_lea.vmem %s417_s2, %s328_s19 }
   0xf   : > { %197 = vperm.xlu1 %341, %v179_v1   ;;  %187 = vperm.xlu0 %340, %v177_v2   ;;  %v181_v3 = vld [vmem:[%s161_s15 + $0x20] sm:$0xff]  ;;  %v178_v5 = vld [vmem:[%s161_s15 + $0x8] sm:$0xff]  ;;  %v184_v7 = vld [vmem:[%s161_s15 + $0x38] sm:$0xff] }
  0x10   : > { %207 = vperm.xlu2 %342, %v181_v3   ;;  %v182_v6 = vld [vmem:[%s161_s15 + $0x28] sm:$0xff]  ;;  %v183_v8 = vld [vmem:[%s161_s15 + $0x30] sm:$0xff]  ;;  %v173_v9 = vld [vmem:[%s381_s18 + $0x20] sm:$0xff] }
  0x11   : > { %v174_v13 = vld [vmem:[%s381_s18 + $0x28] sm:$0xff]  ;;  %v171_v17 = vld [vmem:[%s381_s18 + $0x10] sm:$0xff]  ;;  %v169_v18 = vld [vmem:[%s381_s18] sm:$0xff] }
  0x12   : > { %v172_v25 = vld [vmem:[%s381_s18 + $0x18] sm:$0xff]  ;;  %v170_v26 = vld [vmem:[%s381_s18 + $0x8] sm:$0xff]  ;;  %v175_v34 = vld [vmem:[%s381_s18 + $0x30] sm:$0xff] }
  0x13   : > { %v176_v33 = vld [vmem:[%s381_s18 + $0x38] sm:$0xff] }
  0x17   : > { %202 = vperm.xlu1 %341, %v180_v4   ;;  %192 = vperm.xlu0 %340, %v178_v5  }
  0x18   : > { %212 = vperm.xlu2 %342, %v182_v6  }
  0x1f   : > { %222 = vperm.xlu1 %341, %v184_v7   ;;  %217 = vperm.xlu0 %340, %v183_v8  }
  0x6a   : > { %v208_v10 = vpop.permute.xlu2 %207 }
  0x6b   : > { %v229_v11 = vmul.f32 %v208_v10, %v173_v9 }
  0x6d   : > { %v237_v12 = vpack.c.bf16 %v229_v11, %v229_v11 }
  0x6f   : > { %246 = vst.msk [vmem:[%s387_s22 + $0x10] sm:$0xf] %vm241_vm0, %v237_v12 }
  0x72   : > { %v213_v14 = vpop.permute.xlu2 %212 }
  0x73   : > { %v230_v15 = vmul.f32 %v213_v14, %v174_v13 }
  0x75   : > { %v238_v16 = vpack.c.bf16 %v230_v15, %v230_v15 }
  0x77   : > { %247 = vst.msk [vmem:[%s387_s22 + $0x14] sm:$0xf] %vm241_vm0, %v238_v16 }
  0x81   : > { %v198_v19 = vpop.permute.xlu1 %197  ;;  %v188_v20 = vpop.permute.xlu0 %187 }
  0x82   : > { %v227_v21 = vmul.f32 %v198_v19, %v171_v17  ;;  %v225_v22 = vmul.f32 %v188_v20, %v169_v18 }
  0x84   : > { %v235_v23 = vpack.c.bf16 %v227_v21, %v227_v21  ;;  %v233_v24 = vpack.c.bf16 %v225_v22, %v225_v22 }
  0x86   : > { %244 = vst.msk [vmem:[%s387_s22 + $0x8] sm:$0xf] %vm241_vm0, %v235_v23 }
  0x87   : > { %242 = vst.msk [vmem:[%s387_s22] sm:$0xf] %vm241_vm0, %v233_v24 }
  0x89   : > { %v203_v27 = vpop.permute.xlu1 %202  ;;  %v193_v28 = vpop.permute.xlu0 %192 }
  0x8a   : > { %v228_v29 = vmul.f32 %v203_v27, %v172_v25  ;;  %v226_v30 = vmul.f32 %v193_v28, %v170_v26 }
  0x8c   : > { %v236_v31 = vpack.c.bf16 %v228_v29, %v228_v29  ;;  %v234_v32 = vpack.c.bf16 %v226_v30, %v226_v30 }
  0x8e   : > { %245 = vst.msk [vmem:[%s387_s22 + $0xc] sm:$0xf] %vm241_vm0, %v236_v31 }
  0x8f   : > { %243 = vst.msk [vmem:[%s387_s22 + $0x4] sm:$0xf] %vm241_vm0, %v234_v32 }
  0x91   : > { %v223_v35 = vpop.permute.xlu1 %222  ;;  %v218_v36 = vpop.permute.xlu0 %217 }
  0x92   : > { %v232_v37 = vmul.f32 %v223_v35, %v176_v33  ;;  %v231_v38 = vmul.f32 %v218_v36, %v175_v34 }
  0x94   : > { %v240_v39 = vpack.c.bf16 %v232_v37, %v232_v37  ;;  %v239_v40 = vpack.c.bf16 %v231_v38, %v231_v38 }
  0x96   : > { %249 = vst.msk [vmem:[%s387_s22 + $0x1c] sm:$0xf] %vm241_vm0, %v240_v39 }
  0x97   : > { %248 = vst.msk [vmem:[%s387_s22 + $0x18] sm:$0xf] %vm241_vm0, %v239_v40 }
  0x98 PF: > { %s12_s9 = sadd.s32 1, %s349_s9  }
  0x99   : > { %p9_p4 = scmp.ge.s32.totalorder %s12_s9, 6  }
  0x9b   :  { %11 = sbr.rel (!%p9_p4) target bundleno = 1 (0x1), region = 61 }

// kernel: gcn_forward.5
= control target key start
LH: loop header
LB: loop body
LE: loop exit
PB: predicated region body
PF: predicated region fallthrough
CT: control target
= control target key end

     0   :  { %s566_s9 = smov 0   ;;  %s696_s0 = inlined_call_operand.vmem [shape: s8[256,256], index: 0, kind: input, shape index: {}]   ;;  %s697_s1 = inlined_call_operand.vmem [shape: f32[256,1], index: 1, kind: output, shape index: {0}]   ;;  %s698_s2 = inlined_call_operand.vmem [shape: f32[1,256], index: 2, kind: output, shape index: {1}]  }
   0x1 LB: > { %s572_s10 = sadd.s32 4294967295, %s547_s9   ;;  %p484_p0 = scmp.ge.s32.totalorder %s547_s9, 1  ;;  %s547_s9 = sphi %s566_s9, %s13_s9  }
   0x2   : > { %p112_p1 = scmp.lt.s32.totalorder %s547_s9, 5 }
   0x4   : > { %p113_p2 = pnand %p484_p0, %p112_p1 }
   0x5   : > { %s485_s11 = sshll.u32 (!%p113_p2), %s572_s10, 1  ;;  %s488_s16 = sshll.u32 (!%p113_p2), %s572_s10, 3 }
   0x6   : > { %116 = sbr.rel (%p113_p2) target bundleno = 417 (0x1a1), region = 24  ;;  %p136_p3 = scmp.lt.s32.totalorder (!%p113_p2), %s485_s11, 7 }
   0x7   : > { %p143_p4 = scmp.lt.s32.totalorder (!%p113_p2), %s488_s16, 31  ;;  %p490_p5 = scmp.ne.s32.totalorder (!%p113_p2), %s572_s10, 0 }
   0xb   : > { %v549_v0 = vmov 1065369472   ;;  %s702_s11 = smov (!%p136_p3, %s485_s11), 7  ;;  %s704_s16 = smov (!%p143_p4, %s488_s16), 31  ;;  %vm340_vm1 = vcmask 7168  }
   0xc   : > { %194 = vmatpush.bf16.msra.mxu0 %v549_v0  ;;  %223 = vmatpush.bf16.msra.mxu1 %v549_v0  ;;  %s496_s12 = sshll.u32 %s702_s11, 4  ;;  %s489_s17 = sshll.u32 %s704_s16, 3 }
   0xd   : > { %497 = vmatpush.bf16.msra.mxu2 %v549_v0  ;;  %505 = vmatpush.bf16.msra.mxu3 %v549_v0  ;;  %s140_s15 = scalar_lea.vmem %s696_s0, %s496_s12  ;;  %s640_s20 = scalar_lea.vmem %s697_s1, %s489_s17 }
   0xe   : > { %v150_v1 = vld [vmem:[%s140_s15] sm:$0xff]  ;;  %v151_v2 = vld [vmem:[%s140_s15 + $0x8] sm:$0xff]  ;;  %v152_v3 = vld [vmem:[%s140_s15 + $0x10] sm:$0xff] }
   0xf   : > { %v153_v4 = vld [vmem:[%s140_s15 + $0x18] sm:$0xff]  ;;  %v154_v5 = vunpack.c.0.s8 %v150_v1  ;;  %v156_v6 = vunpack.c.1.s8 %v150_v1  ;;  %v155_v7 = vunpack.c.0.s8 %v151_v2  ;;  %v157_v8 = vunpack.c.1.s8 %v151_v2 }
  0x10   : > { %195 = vmatpush.bf16.msra.mxu0 %v549_v0  ;;  %224 = vmatpush.bf16.msra.mxu1 %v549_v0  ;;  %v166_v9 = vunpack.c.2.s8 %v152_v3  ;;  %v168_v10 = vunpack.c.3.s8 %v152_v3  ;;  %v167_v11 = vunpack.c.2.s8 %v153_v4  ;;  %v169_v12 = vunpack.c.3.s8 %v153_v4 }
  0x11   : > { %498 = vmatpush.bf16.msra.mxu2 %v549_v0  ;;  %506 = vmatpush.bf16.msra.mxu3 %v549_v0  ;;  %v170_v13 = vcvt.s32.f32 %v154_v5  ;;  %v172_v14 = vcvt.s32.f32 %v156_v6  ;;  %v171_v15 = vcvt.s32.f32 %v155_v7  ;;  %v173_v16 = vcvt.s32.f32 %v157_v8 }
  0x12   : > { %v182_v17 = vcvt.s32.f32 %v166_v9  ;;  %v184_v18 = vcvt.s32.f32 %v168_v10  ;;  %v183_v19 = vcvt.s32.f32 %v167_v11  ;;  %v185_v20 = vcvt.s32.f32 %v169_v12 }
  0x13   : > { %v608_v21 = vpack.c.bf16 %v172_v14, %v170_v13  ;;  %v610_v22 = vpack.c.bf16 %v173_v16, %v171_v15  ;;  %v158_v25 = vunpack.c.2.s8 %v150_v1  ;;  %v160_v26 = vunpack.c.3.s8 %v150_v1 }
  0x14   : > { %196 = vmatpush.bf16.msra.mxu0 %v549_v0  ;;  %225 = vmatpush.bf16.msra.mxu1 %v549_v0  ;;  %v614_v23 = vpack.c.bf16 %v184_v18, %v182_v17  ;;  %v616_v24 = vpack.c.bf16 %v185_v20, %v183_v19  ;;  %v159_v27 = vunpack.c.2.s8 %v151_v2  ;;  %v161_v28 = vunpack.c.3.s8 %v151_v2 }
  0x15   : > { %499 = vmatpush.bf16.msra.mxu2 %v549_v0  ;;  %507 = vmatpush.bf16.msra.mxu3 %v549_v0  ;;  %v174_v29 = vcvt.s32.f32 %v158_v25  ;;  %v176_v30 = vcvt.s32.f32 %v160_v26  ;;  %v162_v35 = vunpack.c.0.s8 %v152_v3  ;;  %v164_v36 = vunpack.c.1.s8 %v152_v3 }
  0x16   : > { %v175_v31 = vcvt.s32.f32 %v159_v27  ;;  %v177_v32 = vcvt.s32.f32 %v161_v28  ;;  %v163_v37 = vunpack.c.0.s8 %v153_v4  ;;  %v165_v38 = vunpack.c.1.s8 %v153_v4 }
  0x17   : > { %v624_v33 = vpack.c.bf16 %v176_v30, %v174_v29  ;;  %v178_v39 = vcvt.s32.f32 %v162_v35  ;;  %v180_v40 = vcvt.s32.f32 %v164_v36 }
  0x18   : > { %197 = vmatpush.bf16.msra.mxu0 %v549_v0  ;;  %226 = vmatpush.bf16.msra.mxu1 %v549_v0  ;;  %v626_v34 = vpack.c.bf16 %v177_v32, %v175_v31  ;;  %v179_v41 = vcvt.s32.f32 %v163_v37  ;;  %v181_v42 = vcvt.s32.f32 %v165_v38 }
  0x19   : > { %500 = vmatpush.bf16.msra.mxu2 %v549_v0  ;;  %508 = vmatpush.bf16.msra.mxu3 %v549_v0  ;;  %v630_v43 = vpack.c.bf16 %v180_v40, %v178_v39 }
  0x1a   : > { %v632_v44 = vpack.c.bf16 %v181_v42, %v179_v41 }
  0x1c   : > { %198 = vmatpush.bf16.msra.mxu0 %v549_v0  ;;  %227 = vmatpush.bf16.msra.mxu1 %v549_v0 }
  0x1d   : > { %501 = vmatpush.bf16.msra.mxu2 %v549_v0  ;;  %509 = vmatpush.bf16.msra.mxu3 %v549_v0 }
  0x20   : > { %199 = vmatpush.bf16.msra.mxu0 %v549_v0  ;;  %228 = vmatpush.bf16.msra.mxu1 %v549_v0 }
  0x21   : > { %502 = vmatpush.bf16.msra.mxu2 %v549_v0  ;;  %510 = vmatpush.bf16.msra.mxu3 %v549_v0 }
  0x24   : > { %200 = vmatpush.bf16.msra.mxu0 %v549_v0  ;;  %229 = vmatpush.bf16.msra.mxu1 %v549_v0 }
  0x25   : > { %503 = vmatpush.bf16.msra.mxu2 %v549_v0  ;;  %511 = vmatpush.bf16.msra.mxu3 %v549_v0 }
  0x28   : > { %201 = vmatpush.bf16.msra.mxu0 %v549_v0  ;;  %230 = vmatpush.bf16.msra.mxu1 %v549_v0 }
  0x29   : > { %504 = vmatpush.bf16.msra.mxu2 %v549_v0  ;;  %512 = vmatpush.bf16.msra.mxu3 %v549_v0 }
  0x2b   : > { %202 = vmatmul.bf16.vlgmr.msra.gmra.mxu0 %v608_v21  ;;  %231 = vmatmul.bf16.vlgmr.msra.gmra.mxu1 %v610_v22 }
  0x2c   : > { %217 = vmatmul.bf16.vlgmr.msra.gmra.mxu2 %v614_v23  ;;  %246 = vmatmul.bf16.vlgmr.msra.gmra.mxu3 %v616_v24 }
  0x3b   : > { %207 = vmatmul.bf16.gmra.mxu0 %v624_v33  ;;  %236 = vmatmul.bf16.gmra.mxu1 %v626_v34 }
  0x4b   : > { %212 = vmatmul.bf16.gmra.mxu0 %v630_v43  ;;  %241 = vmatmul.bf16.gmra.mxu1 %v632_v44 }
  0xa8   : > { %v203_v45 = vpop.f32.mrf.mxu0  ;;  %v232_v46 = vpop.f32.mrf.mxu1 }
  0xa9   : > { %v233_v47 = vadd.f32 %v232_v46, %v203_v45 }
  0xab   : > { %v252_v48 = vmax.f32 %v233_v47, 1.0 }
  0xad   : > { %523 = vrsqrt.f32 %v252_v48  ;;  %vm266_vm2 = vweird.f32 %v252_v48 }
  0xaf   : > { %v218_v49 = vpop.f32.mrf.mxu2  ;;  %v247_v50 = vpop.f32.mrf.mxu3 }
  0xb0   : > { %v205_v51 = vpop.f32.mrf.mxu0  ;;  %v234_v52 = vpop.f32.mrf.mxu1  ;;  %v248_v53 = vadd.f32 %v247_v50, %v218_v49 }
  0xb1   : > { %v235_v54 = vadd.f32 %v234_v52, %v205_v51 }
  0xb2   : > { %v258_v55 = vmax.f32 %v248_v53, 1.0 }
  0xb3   : > { %v524_v56 = vpop.eup %523  ;;  %v253_v57 = vmax.f32 %v235_v54, 1.0 }
  0xb4   : > { %v261_v58 = vmul.f32 %v524_v56, %v252_v48  ;;  %525 = vrsqrt.f32 %v258_v55  ;;  %vm267_vm0 = vweird.f32 %v524_v56  ;;  %vm326_vm4 = vweird.f32 %v258_v55 }
  0xb5   : > { %527 = vrsqrt.f32 %v253_v57  ;;  %vm268_vm3 = vmor %vm266_vm2, %vm267_vm0  ;;  %vm276_vm8 = vweird.f32 %v253_v57 }
  0xb6   : > { %v262_v59 = vmul.f32 %v524_v56, %v261_v58 }
  0xb7   : > { %v220_v60 = vpop.f32.mrf.mxu2  ;;  %v249_v61 = vpop.f32.mrf.mxu3 }
  0xb8   : > { %v263_v62 = vmul.f32 0.5, %v262_v59  ;;  %v208_v63 = vpop.f32.mrf.mxu0  ;;  %v237_v1 = vpop.f32.mrf.mxu1  ;;  %v250_v2 = vadd.f32 %v249_v61, %v220_v60 }
  0xb9   : > { %v238_v3 = vadd.f32 %v237_v1, %v208_v63 }
  0xba   : > { %v526_v4 = vpop.eup %525  ;;  %v264_v5 = vsub.f32 1.5, %v263_v62  ;;  %v259_v6 = vmax.f32 %v250_v2, 1.0 }
  0xbb   : > { %v528_v7 = vpop.eup %527  ;;  %v321_v8 = vmul.f32 %v526_v4, %v258_v55  ;;  %v254_v9 = vmax.f32 %v238_v3, 1.0  ;;  %vm327_vm5 = vweird.f32 %v526_v4 }
  0xbc   : > { %v265_v10 = vmul.f32 %v524_v56, %v264_v5  ;;  %v271_v11 = vmul.f32 %v528_v7, %v253_v57  ;;  %529 = vrsqrt.f32 %v259_v6  ;;  %vm277_vm6 = vweird.f32 %v528_v7  ;;  %vm328_vm7 = vmor %vm326_vm4, %vm327_vm5 }
  0xbd   : > { %v322_v12 = vmul.f32 %v526_v4, %v321_v8  ;;  %531 = vrsqrt.f32 %v254_v9  ;;  %vm278_vm9 = vmor %vm276_vm8, %vm277_vm6  ;;  %vm336_vm10 = vweird.f32 %v259_v6  ;;  %vm286_vm14 = vweird.f32 %v254_v9 }
  0xbe   : > { %v269_v13 = vsel %vm268_vm3, %v524_v56, %v265_v10  ;;  %v272_v14 = vmul.f32 %v528_v7, %v271_v11 }
  0xbf   : > { %341 = vst.msk [vmem:[%s640_s20] sm:$0xff] %vm340_vm1, %v269_v13  ;;  %v323_v15 = vmul.f32 0.5, %v322_v12 }
  0xc0   : > { %v273_v16 = vmul.f32 0.5, %v272_v14  ;;  %v210_v17 = vpop.f32.mrf.mxu0  ;;  %v239_v18 = vpop.f32.mrf.mxu1 }
  0xc1   : > { %v324_v19 = vsub.f32 1.5, %v323_v15  ;;  %v240_v20 = vadd.f32 %v239_v18, %v210_v17 }
  0xc2   : > { %v530_v25 = vpop.eup %529  ;;  %v274_v26 = vsub.f32 1.5, %v273_v16 }
  0xc3   : > { %v532_v27 = vpop.eup %531  ;;  %v325_v28 = vmul.f32 %v526_v4, %v324_v19  ;;  %v331_v29 = vmul.f32 %v530_v25, %v259_v6  ;;  %v255_v30 = vmax.f32 %v240_v20, 1.0  ;;  %vm337_vm11 = vweird.f32 %v530_v25 }
  0xc4   : > { %v275_v31 = vmul.f32 %v528_v7, %v274_v26  ;;  %v281_v32 = vmul.f32 %v532_v27, %v254_v9  ;;  %vm287_vm12 = vweird.f32 %v532_v27  ;;  %vm338_vm13 = vmor %vm336_vm10, %vm337_vm11 }
  0xc5   : > { %v329_v35 = vsel %vm328_vm7, %v526_v4, %v325_v28  ;;  %v332_v36 = vmul.f32 %v530_v25, %v331_v29  ;;  %533 = vrsqrt.f32 %v255_v30  ;;  %vm288_vm15 = vmor %vm286_vm14, %vm287_vm12  ;;  %vm296_vm2 = vweird.f32 %v255_v30 }
  0xc6   : > { %v279_v37 = vsel %vm278_vm9, %v528_v7, %v275_v31  ;;  %347 = vst.msk [vmem:[%s640_s20 + $0x30] sm:$0xff] %vm340_vm1, %v329_v35  ;;  %v282_v38 = vmul.f32 %v532_v27, %v281_v32 }
  0xc7   : > { %342 = vst.msk [vmem:[%s640_s20 + $0x8] sm:$0xff] %vm340_vm1, %v279_v37  ;;  %v333_v39 = vmul.f32 0.5, %v332_v36 }
  0xc8   : > { %v283_v40 = vmul.f32 0.5, %v282_v38  ;;  %v213_v41 = vpop.f32.mrf.mxu0  ;;  %v242_v42 = vpop.f32.mrf.mxu1 }
  0xc9   : > { %v334_v45 = vsub.f32 1.5, %v333_v39  ;;  %v243_v46 = vadd.f32 %v242_v42, %v213_v41 }
  0xca   : > { %v284_v47 = vsub.f32 1.5, %v283_v40 }
  0xcb   : > { %v534_v48 = vpop.eup %533  ;;  %v335_v49 = vmul.f32 %v530_v25, %v334_v45  ;;  %v256_v50 = vmax.f32 %v243_v46, 1.0 }
  0xcc   : > { %v285_v51 = vmul.f32 %v532_v27, %v284_v47  ;;  %v291_v52 = vmul.f32 %v534_v48, %v255_v30  ;;  %vm297_vm0 = vweird.f32 %v534_v48 }
  0xcd   : > { %v339_v53 = vsel %vm338_vm13, %v530_v25, %v335_v49  ;;  %535 = vrsqrt.f32 %v256_v50  ;;  %vm298_vm3 = vmor %vm296_vm2, %vm297_vm0  ;;  %vm306_vm5 = vweird.f32 %v256_v50 }
  0xce   : > { %v289_v54 = vsel %vm288_vm15, %v532_v27, %v285_v51  ;;  %348 = vst.msk [vmem:[%s640_s20 + $0x38] sm:$0xff] %vm340_vm1, %v339_v53  ;;  %v292_v55 = vmul.f32 %v534_v48, %v291_v52 }
  0xcf   : > { %343 = vst.msk [vmem:[%s640_s20 + $0x10] sm:$0xff] %vm340_vm1, %v289_v54 }
  0xd0   : > { %v293_v56 = vmul.f32 0.5, %v292_v55  ;;  %v215_v57 = vpop.f32.mrf.mxu0  ;;  %v244_v58 = vpop.f32.mrf.mxu1 }
  0xd1   : > { %v245_v59 = vadd.f32 %v244_v58, %v215_v57 }
  0xd2   : > { %v294_v60 = vsub.f32 1.5, %v293_v56 }
  0xd3   : > { %v536_v61 = vpop.eup %535  ;;  %v257_v62 = vmax.f32 %v245_v59, 1.0 }
  0xd4   : > { %v295_v63 = vmul.f32 %v534_v48, %v294_v60  ;;  %v301_v1 = vmul.f32 %v536_v61, %v256_v50  ;;  %vm307_vm4 = vweird.f32 %v536_v61 }
  0xd5   : > { %537 = vrsqrt.f32 %v257_v62  ;;  %vm308_vm6 = vmor %vm306_vm5, %vm307_vm4  ;;  %vm316_vm8 = vweird.f32 %v257_v62 }
  0xd6   : > { %v299_v2 = vsel %vm298_vm3, %v534_v48, %v295_v63  ;;  %v302_v3 = vmul.f32 %v536_v61, %v301_v1 }
  0xd7   : > { %344 = vst.msk [vmem:[%s640_s20 + $0x18] sm:$0xff] %vm340_vm1, %v299_v2 }
  0xd8   : > { %v303_v4 = vmul.f32 0.5, %v302_v3 }
  0xda   : > { %v304_v5 = vsub.f32 1.5, %v303_v4 }
  0xdb   : > { %v538_v6 = vpop.eup %537 }
  0xdc   : > { %v305_v7 = vmul.f32 %v536_v61, %v304_v5  ;;  %v311_v8 = vmul.f32 %v538_v6, %v257_v62  ;;  %vm317_vm7 = vweird.f32 %v538_v6 }
  0xdd   : > { %vm318_vm9 = vmor %vm316_vm8, %vm317_vm7 }
  0xde   : > { %v309_v9 = vsel %vm308_vm6, %v536_v61, %v305_v7  ;;  %v312_v10 = vmul.f32 %v538_v6, %v311_v8 }
  0xdf   : > { %345 = vst.msk [vmem:[%s640_s20 + $0x20] sm:$0xff] %vm340_vm1, %v309_v9 }
  0xe0   : > { %v313_v11 = vmul.f32 0.5, %v312_v10 }
  0xe2   : > { %v314_v12 = vsub.f32 1.5, %v313_v11 }
  0xe3   : > { %352 = sbr.rel (%p490_p5) target bundleno = 236 (0xec), region = 28 }
  0xe4   : > { %v315_v13 = vmul.f32 %v538_v6, %v314_v12 }
  0xe6   : > { %v319_v14 = vsel %vm318_vm9, %v538_v6, %v315_v13 }
  0xe7   : > { %346 = vst.msk [vmem:[%s640_s20 + $0x28] sm:$0xff] %vm340_vm1, %v319_v14 }
  0xe8   : > { %v353_v15 = vlaneseq  ;;  %v550_v16 = vmov 0.0  }
  0xea   : > { %vm355_vm10 = vcmp.lt.s32.totalorder %v353_v15, 256 }
  0xeb   : > { %357 = vst.msk [vmem:[%s698_s2] sm:$0x3] %vm355_vm10, %v550_v16 }
  0xec PF: > { %367 = vmatpush.bf16.msrb.mxu2 %v614_v23  ;;  %380 = vmatpush.bf16.msrb.mxu3 %v616_v24  ;;  %vm359_vm1 = vcmask 523264   ;;  %v396_v23 = vlaneseq  ;;  %vm392_vm11 = vcmask 1040384   ;;  %p493_p6 = scmp.ne.s32.totalorder %s572_s10, 3 }
  0xee   : > { %vm675_vm12 = vcmp.lt.s32.totalorder %v396_v23, 256 }
  0xf0   : > { %368 = vmatpush.bf16.msrb.mxu2 %v630_v43  ;;  %381 = vmatpush.bf16.msrb.mxu3 %v632_v44 }
  0xf2   : > { %v358_v43 = vld [vmem:[%s698_s2] sm:$0x3] }
  0xf4   : > { %369 = vmatpush.bf16.msrb.mxu2 %v624_v33  ;;  %382 = vmatpush.bf16.msrb.mxu3 %v626_v34 }
  0xf8   : > { %370 = vmatpush.bf16.msrb.mxu2 %v608_v21  ;;  %383 = vmatpush.bf16.msrb.mxu3 %v610_v22 }
  0xfb   : > { %491 = vmatmul.msk.bf16.vlgmr.msrb.gmra.mxu2 %vm359_vm1, %v549_v0  ;;  %492 = vmatmul.msk.bf16.vlgmr.msrb.gmra.mxu3 %vm359_vm1, %v549_v0 }
 0x17e   : > { %v372_v17 = vpop.f32.mrf.mxu2  ;;  %v385_v24 = vpop.f32.mrf.mxu3 }
 0x17f   : > { %v391_v33 = vrot.slane %v385_v24, 7 }
 0x181   : > { %v393_v44 = vsel %vm392_vm11, %v372_v17, %v391_v33 }
 0x182   : > { %v395_v21 = vadd.f32 %v393_v44, %v358_v43  ;;  %404 = sbr.rel (%p493_p6) target bundleno = 417 (0x1a1), region = 32 }
 0x184   : > { %400 = vst.msk [vmem:[%s698_s2] sm:$0x3] %vm675_vm12, %v395_v21 }
 0x186   : > { %v374_v0 = vpop.f32.mrf.mxu2  ;;  %v387_v22 = vpop.f32.mrf.mxu3 }
 0x18b   : > { %v405_v18 = vld [vmem:[%s698_s2] sm:$0x3] }
 0x18c   : > { %v406_v19 = vmax.f32 %v405_v18, 1.0 }
 0x18e   : > { %539 = vrsqrt.f32 %v406_v19  ;;  %vm413_vm13 = vweird.f32 %v406_v19 }
 0x194   : > { %v540_v20 = vpop.eup %539 }
 0x195   : > { %v408_v25 = vmul.f32 %v540_v20, %v406_v19  ;;  %vm414_vm14 = vweird.f32 %v540_v20 }
 0x196   : > { %vm415_vm15 = vmor %vm413_vm13, %vm414_vm14 }
 0x197   : > { %v409_v26 = vmul.f32 %v540_v20, %v408_v25 }
 0x199   : > { %v410_v27 = vmul.f32 0.5, %v409_v26 }
 0x19b   : > { %v411_v28 = vsub.f32 1.5, %v410_v27 }
 0x19d   : > { %v412_v29 = vmul.f32 %v540_v20, %v411_v28 }
 0x19f   : > { %v416_v30 = vsel %vm415_vm15, %v540_v20, %v412_v29 }
 0x1a0   : > { %417 = vst.msk [vmem:[%s698_s2] sm:$0x3] %vm675_vm12, %v416_v30 }
 0x1a1 PF: > { %s13_s9 = sadd.s32 1, %s547_s9  }
 0x1a2   : > { %p10_p7 = scmp.ge.s32.totalorder %s13_s9, 6  }
 0x1a4   :  { %12 = sbr.rel (!%p10_p7) target bundleno = 1 (0x1), region = 70 }

// kernel: gcn_forward.7
= control target key start
LH: loop header
LB: loop body
LE: loop exit
PB: predicated region body
PF: predicated region fallthrough
CT: control target
= control target key end

     0   :  { %s1285_s0 = inlined_call_operand.vmem [shape: s8[256,256], index: 0, kind: input, shape index: {}]   ;;  %s1286_s1 = inlined_call_operand.vmem [shape: bf16[256,16], index: 1, kind: input, shape index: {}]   ;;  %s1287_s2 = inlined_call_operand.vmem [shape: f32[256,1], index: 2, kind: input, shape index: {}]   ;;  %s1288_s3 = inlined_call_operand.vmem [shape: f32[256,1], index: 3, kind: input, shape index: {}]   ;;  %s1289_s4 = inlined_call_operand.vmem [shape: bf16[16,128], index: 4, kind: input, shape index: {}]   ;;  %s1290_s5 = inlined_call_operand.vmem [shape: f32[1,128], index: 5, kind: input, shape index: {}]   ;;  %s1291_s6 = inlined_call_operand.vmem [shape: bf16[256,128], index: 6, kind: output, shape index: {}]  }
   0x1   :  { %1292 = sst [smem:[#allocation4_spill]] %s1285_s0 }
   0x2   :  { %s1124_s21 = smov 0   ;;  %s1126_s22 = smov 0  }
   0x3   :  { %s1128_s23 = smov 0   ;;  %s1130_s24 = smov 0  }
   0x4   :  { %s1132_s25 = smov 0   ;;  %s1134_s26 = smov 0  }
   0x5   :  { %s1136_s27 = smov 0  }
   0x6 LB: > { %s25_s28 = sadd.s32 1, %s1077_s25  ;;  %s28_s29 = sadd.s32 1, %s1081_s26  ;;  %s1085_s27 = sphi %s1136_s27, %s16_s27   ;;  %s1081_s26 = sphi %s1134_s26, %s1299_s26   ;;  %s1077_s25 = sphi %s1132_s25, %s1298_s25   ;;  %s1073_s24 = sphi %s1130_s24, %s1297_s24   ;;  %s1069_s23 = sphi %s1128_s23, %s1296_s23   ;;  %s1065_s22 = sphi %s1126_s22, %s1295_s22   ;;  %s1061_s21 = sphi %s1124_s21, %s1294_s21  }
   0x7   : > { %p26_p0 = scmp.ge.s32.totalorder %s25_s28, 2  ;;  %p44_p1 = scmp.ne.s32.totalorder %s1065_s22, %s1061_s21 }
   0x8   : > { %p45_p2 = scmp.eq.s32.totalorder %s1085_s27, 0  ;;  %s37_s9 = sadd.s32 1, %s1065_s22 }
   0x9   : > { %s1301_s28 = smov (%p26_p0, %s25_s28), 0  ;;  %s1303_s29 = smov (!%p26_p0, %s28_s29), %s1081_s26 }
   0xa   : > { %p46_p3 = por %p45_p2, %p44_p1  ;;  %p30_p4 = scmp.ge.s32.totalorder %s1303_s29, 4 }
   0xb   : > { %s33_s30 = ssub.s32 %s1077_s25, %s1301_s28  ;;  %p850_p6 = scmp.ge.s32.totalorder %s1085_s27, 8 }
   0xc   : > { %s1305_s29 = smov (%p30_p4, %s1303_s29), 0 }
   0xd   : > { %s32_s7 = ssub.s32 %s1081_s26, %s1305_s29  ;;  %222 = sbr.rel (%p850_p6) target bundleno = 30 (0x1e), region = 24 }
   0xe   : > { %s34_s8 = sor.u32 %s33_s30, %s32_s7 }
   0xf   : > { %p35_p5 = scmp.eq.s32.totalorder %s34_s8, 0 }
  0x11   : > { %s1175_s10 = scalar_select %p35_p5, %s1065_s22, %s37_s9  }
  0x12   : > { %225 = sbr.rel (!%p46_p3) target bundleno = 30 (0x1e), region = 28  ;;  %s227_s11 = sand.u32 (%p46_p3), 1, %s1065_s22  }
  0x13   : > { %s909_s12 = sshll.u32 (%p46_p3), %s1081_s26, 2  ;;  %s851_s13 = sshll.u32 (%p46_p3), %s227_s11, 4 }
  0x14   : > { %s232_s14 = sadd.s32 (%p46_p3), %s1077_s25, %s909_s12  ;;  %s1293_s0 = sld [smem:[#allocation4_spill]] (%p46_p3) }
  0x15   : > { %s854_s15 = sshll.u32 (%p46_p3), %s232_s14, 3  ;;  %s229_s19 = scalar_lea.vmem (%p46_p3), [#allocation3], %s851_s13 }
  0x1a   : > { %s234_s18 = scalar_lea.vmem %s1293_s0, %s854_s15 }
  0x1b   : > { %v265_v0 = vld [vmem:[%s234_s18] sm:$0xff]  ;;  %v267_v1 = vld [vmem:[%s234_s18 + $0x10] sm:$0xff] }
  0x1c   : > { %266 = vst [vmem:[%s229_s19] sm:$0xff] %v265_v0 }
  0x1d   : > { %268 = vst [vmem:[%s229_s19 + $0x8] sm:$0xff] %v267_v1 }
  0x1e PF: > { %p855_p7 = scmp.ge.s32.totalorder %s1085_s27, 1  ;;  %p300_p8 = scmp.lt.s32.totalorder %s1085_s27, 9 }
  0x20   : > { %p301_p9 = pnand %p855_p7, %p300_p8 }
  0x21   : > { %s307_s20 = sand.u32 (!%p301_p9), 1, %s1061_s21   ;;  %s857_s30 = sshll.u32 (!%p301_p9), %s1069_s23, 4 }
  0x22   : > { %304 = sbr.rel (%p301_p9) target bundleno = 516 (0x204), region = 78  ;;  %s1188_s7 = sshll.u32 (!%p301_p9), %s307_s20, 4 }
  0x23   : > { %p353_p10 = scmp.lt.s32.totalorder (!%p301_p9), %s857_s30, 31  ;;  %s859_s8 = sshll.u32 (!%p301_p9), %s1073_s24, 3 }
  0x24   : > { %p359_p11 = scmp.lt.s32.totalorder (!%p301_p9), %s859_s8, 31  ;;  %p865_p12 = scmp.ne.s32.totalorder (!%p301_p9), %s1069_s23, 0 }
  0x27   : > { %s1307_s30 = smov (!%p353_p10, %s857_s30), 31  ;;  %s1309_s8 = smov (!%p359_p11, %s859_s8), 31 }
  0x28   : > { %s858_s9 = sshll.u32 %s1307_s30, 2  ;;  %s860_s14 = sshll.u32 %s1309_s8, 3 }
  0x29   : > { %s1194_s13 = scalar_lea.vmem %s1286_s1, %s858_s9  ;;  %s864_s15 = sshll.u32 %s1309_s8, 2 }
  0x2a   : > { %s1199_s21 = scalar_lea.vmem %s1287_s2, %s860_s14  ;;  %s1204_s24 = scalar_lea.vmem %s1288_s3, %s860_s14 }
  0x2b   : > { %s1209_s0 = scalar_lea.vmem %s1291_s6, %s864_s15  ;;  %s309_s9 = scalar_lea.vmem [#allocation3], %s1188_s7 }
  0x2c   : > { %380 = sbr.rel (%p865_p12) target bundleno = 58 (0x3a), region = 86 }
  0x31   : > { %vm381_vm0 = vcmask 130048   ;;  %v1087_v2 = vmov 0.0  }
  0x32   : > { %382 = vst.msk [vmem:[#allocation2] sm:$0xff] %vm381_vm0, %v1087_v2 }
  0x33   : > { %383 = vst.msk [vmem:[#allocation2 + $0x8] sm:$0xff] %vm381_vm0, %v1087_v2 }
  0x34   : > { %384 = vst.msk [vmem:[#allocation2 + $0x10] sm:$0xff] %vm381_vm0, %v1087_v2 }
  0x35   : > { %385 = vst.msk [vmem:[#allocation2 + $0x18] sm:$0xff] %vm381_vm0, %v1087_v2 }
  0x36   : > { %386 = vst.msk [vmem:[#allocation2 + $0x20] sm:$0xff] %vm381_vm0, %v1087_v2 }
  0x37   : > { %387 = vst.msk [vmem:[#allocation2 + $0x28] sm:$0xff] %vm381_vm0, %v1087_v2 }
  0x38   : > { %388 = vst.msk [vmem:[#allocation2 + $0x30] sm:$0xff] %vm381_vm0, %v1087_v2 }
  0x39   : > { %389 = vst.msk [vmem:[#allocation2 + $0x38] sm:$0xff] %vm381_vm0, %v1087_v2 }
  0x3a PF: > { %v917_v3 = vld [vmem:[%s1194_s13 + $0x38] sm:$0xff]  ;;  %v916_v4 = vld [vmem:[%s1194_s13 + $0x30] sm:$0xff]  ;;  %v915_v5 = vld [vmem:[%s1194_s13 + $0x28] sm:$0xff]  ;;  %vm521_vm1 = vcmask 130048   ;;  %p898_p13 = scmp.ne.s32.totalorder %s1069_s23, 1 }
  0x3b   : > { %484 = vmatpush.bf16.msra.mxu0 %v917_v3  ;;  %942 = vmatpush.bf16.msra.mxu1 %v917_v3  ;;  %v914_v6 = vld [vmem:[%s1194_s13 + $0x20] sm:$0xff]  ;;  %v913_v7 = vld [vmem:[%s1194_s13 + $0x18] sm:$0xff]  ;;  %v912_v8 = vld [vmem:[%s1194_s13 + $0x10] sm:$0xff] }
  0x3c   : > { %943 = vmatpush.bf16.msra.mxu2 %v917_v3  ;;  %944 = vmatpush.bf16.msra.mxu3 %v917_v3  ;;  %v398_v9 = vld [vmem:[%s309_s9] sm:$0xff]  ;;  %v399_v10 = vld [vmem:[%s309_s9 + $0x8] sm:$0xff] }
  0x3d   : > { %v400_v11 = vunpack.c.0.s8 %v398_v9  ;;  %v401_v12 = vunpack.c.1.s8 %v398_v9  ;;  %v402_v13 = vunpack.c.2.s8 %v398_v9  ;;  %v403_v14 = vunpack.c.3.s8 %v398_v9  ;;  %v911_v15 = vld [vmem:[%s1194_s13 + $0x8] sm:$0xff]  ;;  %v910_v24 = vld [vmem:[%s1194_s13] sm:$0xff]  ;;  %v392_v34 = vld [vmem:[#allocation2 + $0x10] sm:$0xff] }
  0x3e   : > { %v404_v16 = vunpack.c.0.s8 %v399_v10  ;;  %v405_v17 = vunpack.c.1.s8 %v399_v10  ;;  %v406_v18 = vunpack.c.2.s8 %v399_v10  ;;  %v407_v19 = vunpack.c.3.s8 %v399_v10  ;;  %v390_v33 = vld [vmem:[#allocation2] sm:$0xff]  ;;  %v391_v41 = vld [vmem:[#allocation2 + $0x8] sm:$0xff]  ;;  %v393_v42 = vld [vmem:[#allocation2 + $0x18] sm:$0xff] }
  0x3f   : > { %485 = vmatpush.bf16.msra.mxu0 %v916_v4  ;;  %945 = vmatpush.bf16.msra.mxu1 %v916_v4  ;;  %v408_v20 = vcvt.s32.f32 %v400_v11  ;;  %v409_v21 = vcvt.s32.f32 %v401_v12  ;;  %v410_v22 = vcvt.s32.f32 %v402_v13  ;;  %v411_v23 = vcvt.s32.f32 %v403_v14  ;;  %v394_v39 = vld [vmem:[#allocation2 + $0x20] sm:$0xff]  ;;  %v396_v40 = vld [vmem:[#allocation2 + $0x30] sm:$0xff]  ;;  %v395_v51 = vld [vmem:[#allocation2 + $0x28] sm:$0xff] }
  0x40   : > { %946 = vmatpush.bf16.msra.mxu2 %v916_v4  ;;  %947 = vmatpush.bf16.msra.mxu3 %v916_v4  ;;  %v412_v25 = vcvt.s32.f32 %v404_v16  ;;  %v413_v26 = vcvt.s32.f32 %v405_v17  ;;  %v414_v27 = vcvt.s32.f32 %v406_v18  ;;  %v415_v28 = vcvt.s32.f32 %v407_v19  ;;  %v397_v52 = vld [vmem:[#allocation2 + $0x38] sm:$0xff] }
  0x41   : > { %v416_v29 = vpack.c.bf16 %v409_v21, %v408_v20  ;;  %v417_v30 = vpack.c.bf16 %v411_v23, %v410_v22 }
  0x42   : > { %v418_v31 = vpack.c.bf16 %v413_v26, %v412_v25  ;;  %v419_v32 = vpack.c.bf16 %v415_v28, %v414_v27 }
  0x43   : > { %486 = vmatpush.bf16.msra.mxu0 %v915_v5  ;;  %948 = vmatpush.bf16.msra.mxu1 %v915_v5 }
  0x44   : > { %949 = vmatpush.bf16.msra.mxu2 %v915_v5  ;;  %950 = vmatpush.bf16.msra.mxu3 %v915_v5 }
  0x47   : > { %487 = vmatpush.bf16.msra.mxu0 %v914_v6  ;;  %951 = vmatpush.bf16.msra.mxu1 %v914_v6 }
  0x48   : > { %952 = vmatpush.bf16.msra.mxu2 %v914_v6  ;;  %953 = vmatpush.bf16.msra.mxu3 %v914_v6 }
  0x4b   : > { %488 = vmatpush.bf16.msra.mxu0 %v913_v7  ;;  %954 = vmatpush.bf16.msra.mxu1 %v913_v7 }
  0x4c   : > { %955 = vmatpush.bf16.msra.mxu2 %v913_v7  ;;  %956 = vmatpush.bf16.msra.mxu3 %v913_v7 }
  0x4f   : > { %489 = vmatpush.bf16.msra.mxu0 %v912_v8  ;;  %957 = vmatpush.bf16.msra.mxu1 %v912_v8 }
  0x50   : > { %958 = vmatpush.bf16.msra.mxu2 %v912_v8  ;;  %959 = vmatpush.bf16.msra.mxu3 %v912_v8 }
  0x53   : > { %490 = vmatpush.bf16.msra.mxu0 %v911_v15  ;;  %960 = vmatpush.bf16.msra.mxu1 %v911_v15 }
  0x54   : > { %961 = vmatpush.bf16.msra.mxu2 %v911_v15  ;;  %962 = vmatpush.bf16.msra.mxu3 %v911_v15 }
  0x57   : > { %491 = vmatpush.bf16.msra.mxu0 %v910_v24  ;;  %963 = vmatpush.bf16.msra.mxu1 %v910_v24 }
  0x58   : > { %964 = vmatpush.bf16.msra.mxu2 %v910_v24  ;;  %965 = vmatpush.bf16.msra.mxu3 %v910_v24 }
  0x5a   : > { %492 = vmatmul.bf16.vlgmr.msra.gmra.mxu0 %v416_v29  ;;  %497 = vmatmul.bf16.vlgmr.msra.gmra.mxu1 %v417_v30 }
  0x5b   : > { %502 = vmatmul.bf16.vlgmr.msra.gmra.mxu2 %v418_v31  ;;  %507 = vmatmul.bf16.vlgmr.msra.gmra.mxu3 %v419_v32 }
  0xd7   : > { %v493_v35 = vpop.f32.mrf.mxu0  ;;  %v498_v36 = vpop.f32.mrf.mxu1 }
  0xd8   : > { %v513_v37 = vadd.f32 %v493_v35, %v390_v33  ;;  %v515_v38 = vadd.f32 %v498_v36, %v392_v34 }
  0xda   : > { %522 = vst.msk [vmem:[#allocation2] sm:$0xff] %vm521_vm1, %v513_v37 }
  0xdb   : > { %524 = vst.msk [vmem:[#allocation2 + $0x10] sm:$0xff] %vm521_vm1, %v515_v38 }
  0xde   : > { %v503_v43 = vpop.f32.mrf.mxu2  ;;  %v508_v44 = vpop.f32.mrf.mxu3 }
  0xdf   : > { %v517_v45 = vadd.f32 %v503_v43, %v394_v39  ;;  %v519_v46 = vadd.f32 %v508_v44, %v396_v40  ;;  %v495_v47 = vpop.f32.mrf.mxu0  ;;  %v500_v48 = vpop.f32.mrf.mxu1 }
  0xe0   : > { %v514_v49 = vadd.f32 %v495_v47, %v391_v41  ;;  %v516_v50 = vadd.f32 %v500_v48, %v393_v42 }
  0xe1   : > { %526 = vst.msk [vmem:[#allocation2 + $0x20] sm:$0xff] %vm521_vm1, %v517_v45 }
  0xe2   : > { %528 = vst.msk [vmem:[#allocation2 + $0x30] sm:$0xff] %vm521_vm1, %v519_v46 }
  0xe3   : > { %523 = vst.msk [vmem:[#allocation2 + $0x8] sm:$0xff] %vm521_vm1, %v514_v49 }
  0xe4   : > { %525 = vst.msk [vmem:[#allocation2 + $0x18] sm:$0xff] %vm521_vm1, %v516_v50 }
  0xe6   : > { %v505_v53 = vpop.f32.mrf.mxu2  ;;  %v510_v54 = vpop.f32.mrf.mxu3  ;;  %533 = sbr.rel (%p898_p13) target bundleno = 516 (0x204), region = 90 }
  0xe7   : > { %v518_v55 = vadd.f32 %v505_v53, %v395_v51  ;;  %v520_v56 = vadd.f32 %v510_v54, %v397_v52 }
  0xe9   : > { %527 = vst.msk [vmem:[#allocation2 + $0x28] sm:$0xff] %vm521_vm1, %v518_v55 }
  0xea   : > { %529 = vst.msk [vmem:[#allocation2 + $0x38] sm:$0xff] %vm521_vm1, %v520_v56 }
  0xeb   : > { %v548_v57 = vld [vmem:[%s1199_s21 + $0x30] sm:$0xff]  ;;  %v546_v58 = vld [vmem:[%s1199_s21 + $0x20] sm:$0xff]  ;;  %v1088_v60 = vmov 0   ;;  %v549_v61 = vld [vmem:[%s1199_s21 + $0x38] sm:$0xff] }
  0xec   : > { %v542_v59 = vld [vmem:[%s1199_s21] sm:$0xff]  ;;  %1029 = vset.pattern.permute.xlu2 %v1088_v60  ;;  %1028 = vset.pattern.permute.xlu1 %v1088_v60  ;;  %v547_v62 = vld [vmem:[%s1199_s21 + $0x28] sm:$0xff]  ;;  %v545_v0 = vld [vmem:[%s1199_s21 + $0x18] sm:$0xff] }
  0xed   : > { %1027 = vset.pattern.permute.xlu0 %v1088_v60  ;;  %582 = vperm.xlu1 %1028, %v548_v57   ;;  %v543_v63 = vld [vmem:[%s1199_s21 + $0x8] sm:$0xff]  ;;  %v544_v1 = vld [vmem:[%s1199_s21 + $0x10] sm:$0xff]  ;;  %v663_v2 = vld [vmem:[%s1204_s24] sm:$0xff] }
  0xee   : > { %572 = vperm.xlu0 %1027, %v546_v58   ;;  %552 = vperm.xlu2 %1029, %v542_v59   ;;  %v665_v3 = vld [vmem:[%s1204_s24 + $0x10] sm:$0xff]  ;;  %v664_v4 = vld [vmem:[%s1204_s24 + $0x8] sm:$0xff]  ;;  %v666_v5 = vld [vmem:[%s1204_s24 + $0x18] sm:$0xff] }
  0xef   : > { %v668_v6 = vld [vmem:[%s1204_s24 + $0x28] sm:$0xff]  ;;  %v667_v7 = vld [vmem:[%s1204_s24 + $0x20] sm:$0xff]  ;;  %v669_v8 = vld [vmem:[%s1204_s24 + $0x30] sm:$0xff] }
  0xf0   : > { %v670_v9 = vld [vmem:[%s1204_s24 + $0x38] sm:$0xff]  ;;  %v918_v10 = vld [vmem:[%s1289_s4] sm:$0xff]  ;;  %v535_v13 = vld [vmem:[#allocation2 + $0x8] sm:$0xff] }
  0xf1   : > { %633 = vmatpush.bf16.msra.mxu0 %v918_v10  ;;  %967 = vmatpush.bf16.msra.mxu2 %v918_v10  ;;  %v534_v12 = vld [vmem:[#allocation2] sm:$0xff]  ;;  %v540_v20 = vld [vmem:[#allocation2 + $0x30] sm:$0xff]  ;;  %v541_v21 = vld [vmem:[#allocation2 + $0x38] sm:$0xff] }
  0xf2   : > { %968 = vmatpush.bf16.msra.mxu3 %v918_v10  ;;  %966 = vmatpush.bf16.msra.mxu1 %v918_v10  ;;  %v538_v22 = vld [vmem:[#allocation2 + $0x20] sm:$0xff]  ;;  %v539_v23 = vld [vmem:[#allocation2 + $0x28] sm:$0xff]  ;;  %v537_v32 = vld [vmem:[#allocation2 + $0x18] sm:$0xff] }
  0xf3   : > { %v536_v33 = vld [vmem:[#allocation2 + $0x10] sm:$0xff]  ;;  %v1030_v40 = vld [vmem:[%s1290_s5] ss:$0 sm:$0xff] }
  0xf5   : > { %587 = vperm.xlu1 %1028, %v549_v61  }
  0xf6   : > { %577 = vperm.xlu0 %1027, %v547_v62   ;;  %557 = vperm.xlu2 %1029, %v543_v63  }
  0xfd   : > { %567 = vperm.xlu1 %1028, %v545_v0  }
  0xfe   : > { %562 = vperm.xlu0 %1027, %v544_v1   ;;  %673 = vperm.xlu2 %1029, %v663_v2  }
 0x105   : > { %683 = vperm.xlu1 %1028, %v665_v3  }
 0x106   : > { %678 = vperm.xlu0 %1027, %v664_v4   ;;  %688 = vperm.xlu2 %1029, %v666_v5  }
 0x10d   : > { %698 = vperm.xlu1 %1028, %v668_v6  }
 0x10e   : > { %693 = vperm.xlu0 %1027, %v667_v7   ;;  %703 = vperm.xlu2 %1029, %v669_v8  }
 0x116   : > { %708 = vperm.xlu0 %1027, %v670_v9  }
 0x148   : > { %v553_v11 = vpop.permute.xlu2 %552 }
 0x149   : > { %v590_v14 = vmul.f32 %v553_v11, %v534_v12 }
 0x150   : > { %v558_v15 = vpop.permute.xlu2 %557 }
 0x151   : > { %v591_v16 = vmul.f32 %v558_v15, %v535_v13 }
 0x153   : > { %v598_v17 = vpack.c.bf16 %v591_v16, %v590_v14 }
 0x155   : > { %903 = vmatmul.msk.bf16.vlgmr.msra.gmra.mxu0 %vm521_vm1, %v598_v17 }
 0x158   : > { %v674_v46 = vpop.permute.xlu2 %673 }
 0x15f   : > { %v583_v18 = vpop.permute.xlu1 %582 }
 0x160   : > { %v573_v19 = vpop.permute.xlu0 %572  ;;  %v596_v25 = vmul.f32 %v583_v18, %v540_v20  ;;  %v689_v53 = vpop.permute.xlu2 %688 }
 0x161   : > { %v594_v28 = vmul.f32 %v573_v19, %v538_v22 }
 0x167   : > { %v588_v24 = vpop.permute.xlu1 %587 }
 0x168   : > { %v597_v26 = vmul.f32 %v588_v24, %v541_v21  ;;  %v578_v27 = vpop.permute.xlu0 %577  ;;  %v704_v4 = vpop.permute.xlu2 %703 }
 0x169   : > { %v595_v29 = vmul.f32 %v578_v27, %v539_v23 }
 0x16a   : > { %v601_v30 = vpack.c.bf16 %v597_v26, %v596_v25 }
 0x16b   : > { %v600_v31 = vpack.c.bf16 %v595_v29, %v594_v28 }
 0x16c   : > { %906 = vmatmul.msk.bf16.vlgmr.msra.gmra.mxu3 %vm521_vm1, %v601_v30 }
 0x16d   : > { %905 = vmatmul.msk.bf16.vlgmr.msra.gmra.mxu2 %vm521_vm1, %v600_v31 }
 0x16f   : > { %v568_v34 = vpop.permute.xlu1 %567 }
 0x170   : > { %v593_v35 = vmul.f32 %v568_v34, %v537_v32  ;;  %v563_v36 = vpop.permute.xlu0 %562 }
 0x171   : > { %v592_v37 = vmul.f32 %v563_v36, %v536_v33 }
 0x173   : > { %v599_v38 = vpack.c.bf16 %v593_v35, %v592_v37 }
 0x175   : > { %904 = vmatmul.msk.bf16.vlgmr.msra.gmra.mxu1 %vm521_vm1, %v599_v38 }
 0x177   : > { %v684_v55 = vpop.permute.xlu1 %683 }
 0x178   : > { %v679_v47 = vpop.permute.xlu0 %678 }
 0x17f   : > { %v699_v9 = vpop.permute.xlu1 %698 }
 0x180   : > { %v694_v54 = vpop.permute.xlu0 %693 }
 0x188   : > { %v709_v5 = vpop.permute.xlu0 %708 }
 0x1d2   : > { %v635_v39 = vpop.f32.mrf.mxu0 }
 0x1d3   : > { %v636_v41 = vadd.f32 %v1030_v40, %v635_v39 }
 0x1d5   : > { %v655_v43 = vmax.f32 %v636_v41, 0.0 }
 0x1d7   : > { %v711_v48 = vmul.f32 %v674_v46, %v655_v43 }
 0x1da   : > { %v637_v42 = vpop.f32.mrf.mxu0 }
 0x1db   : > { %v638_v44 = vadd.f32 %v1030_v40, %v637_v42 }
 0x1dd   : > { %v656_v45 = vmax.f32 %v638_v44, 0.0 }
 0x1df   : > { %v712_v49 = vmul.f32 %v679_v47, %v656_v45 }
 0x1e1   : > { %v922_v50 = vpack.c.bf16 %v712_v49, %v711_v48 }
 0x1e3   : > { %923 = vst [vmem:[%s1209_s0] sm:$0xff] %v922_v50  }
 0x1ef   : > { %v650_v51 = vpop.f32.mrf.mxu3 }
 0x1f0   : > { %v645_v52 = vpop.f32.mrf.mxu2  ;;  %v651_v57 = vadd.f32 %v1030_v40, %v650_v51 }
 0x1f1   : > { %v646_v58 = vadd.f32 %v1030_v40, %v645_v52 }
 0x1f2   : > { %v640_v56 = vpop.f32.mrf.mxu1  ;;  %v661_v61 = vmax.f32 %v651_v57, 0.0 }
 0x1f3   : > { %v641_v59 = vadd.f32 %v1030_v40, %v640_v56  ;;  %v659_v0 = vmax.f32 %v646_v58, 0.0 }
 0x1f4   : > { %v717_v10 = vmul.f32 %v704_v4, %v661_v61 }
 0x1f5   : > { %v657_v6 = vmax.f32 %v641_v59, 0.0  ;;  %v715_v12 = vmul.f32 %v694_v54, %v659_v0 }
 0x1f7   : > { %v652_v60 = vpop.f32.mrf.mxu3  ;;  %v713_v16 = vmul.f32 %v684_v55, %v657_v6 }
 0x1f8   : > { %v647_v62 = vpop.f32.mrf.mxu2  ;;  %v653_v63 = vadd.f32 %v1030_v40, %v652_v60 }
 0x1f9   : > { %v648_v1 = vadd.f32 %v1030_v40, %v647_v62 }
 0x1fa   : > { %v662_v2 = vmax.f32 %v653_v63, 0.0  ;;  %v642_v3 = vpop.f32.mrf.mxu1 }
 0x1fb   : > { %v660_v7 = vmax.f32 %v648_v1, 0.0  ;;  %v643_v8 = vadd.f32 %v1030_v40, %v642_v3 }
 0x1fc   : > { %v718_v11 = vmul.f32 %v709_v5, %v662_v2 }
 0x1fd   : > { %v716_v13 = vmul.f32 %v699_v9, %v660_v7  ;;  %v658_v14 = vmax.f32 %v643_v8, 0.0 }
 0x1fe   : > { %v937_v15 = vpack.c.bf16 %v718_v11, %v717_v10 }
 0x1ff   : > { %v932_v17 = vpack.c.bf16 %v716_v13, %v715_v12  ;;  %v714_v18 = vmul.f32 %v689_v53, %v658_v14 }
 0x200   : > { %941 = vst [vmem:[%s1209_s0 + $0x18] sm:$0xff] %v937_v15  }
 0x201   : > { %940 = vst [vmem:[%s1209_s0 + $0x10] sm:$0xff] %v932_v17   ;;  %v927_v19 = vpack.c.bf16 %v714_v18, %v713_v16 }
 0x203   : > { %939 = vst [vmem:[%s1209_s0 + $0x8] sm:$0xff] %v927_v19  }
 0x204 PF: > { %s16_s27 = sadd.s32 1, %s1085_s27   ;;  %s1294_s21 = smov %s1065_s22 }
 0x205   : > { %p13_p0 = scmp.ge.s32.totalorder %s16_s27, 10   ;;  %s1295_s22 = smov %s1175_s10 }
 0x206   : > { %s1296_s23 = smov %s1077_s25  ;;  %s1297_s24 = smov %s1081_s26 }
 0x207   : > { %s1298_s25 = smov %s1301_s28  ;;  %s1299_s26 = smov %s1305_s29 }
 0x208   :  { %15 = sbr.rel (!%p13_p0) target bundleno = 6 (0x6), region = 134 }

// kernel: gcn_forward.8
= control target key start
LH: loop header
LB: loop body
LE: loop exit
PB: predicated region body
PF: predicated region fallthrough
CT: control target
= control target key end

     0   :  { %s1387_s0 = inlined_call_operand.vmem [shape: s8[256,256], index: 0, kind: input, shape index: {}]   ;;  %s1388_s1 = inlined_call_operand.vmem [shape: bf16[256,128], index: 1, kind: input, shape index: {}]   ;;  %s1389_s2 = inlined_call_operand.vmem [shape: f32[256,1], index: 2, kind: input, shape index: {}]   ;;  %s1390_s3 = inlined_call_operand.vmem [shape: f32[256,1], index: 3, kind: input, shape index: {}]   ;;  %s1391_s4 = inlined_call_operand.vmem [shape: bf16[128,128], index: 4, kind: input, shape index: {}]   ;;  %s1392_s5 = inlined_call_operand.vmem [shape: f32[1,128], index: 5, kind: input, shape index: {}]   ;;  %s1393_s6 = inlined_call_operand.vmem [shape: bf16[256,128], index: 6, kind: output, shape index: {}]  }
   0x1   :  { %1394 = sst [smem:[#allocation4_spill]] %s1387_s0 }
   0x2   :  { %s1217_s21 = smov 0   ;;  %s1219_s22 = smov 0  }
   0x3   :  { %s1221_s23 = smov 0   ;;  %s1223_s24 = smov 0  }
   0x4   :  { %s1225_s25 = smov 0   ;;  %s1227_s26 = smov 0  }
   0x5   :  { %s1229_s27 = smov 0  }
   0x6 LB: > { %s25_s28 = sadd.s32 1, %s1170_s25  ;;  %s28_s29 = sadd.s32 1, %s1174_s26  ;;  %s1178_s27 = sphi %s1229_s27, %s16_s27   ;;  %s1174_s26 = sphi %s1227_s26, %s1401_s26   ;;  %s1170_s25 = sphi %s1225_s25, %s1400_s25   ;;  %s1166_s24 = sphi %s1223_s24, %s1399_s24   ;;  %s1162_s23 = sphi %s1221_s23, %s1398_s23   ;;  %s1158_s22 = sphi %s1219_s22, %s1397_s22   ;;  %s1154_s21 = sphi %s1217_s21, %s1396_s21  }
   0x7   : > { %p26_p0 = scmp.ge.s32.totalorder %s25_s28, 2  ;;  %p44_p1 = scmp.ne.s32.totalorder %s1158_s22, %s1154_s21 }
   0x8   : > { %p45_p2 = scmp.eq.s32.totalorder %s1178_s27, 0  ;;  %s37_s9 = sadd.s32 1, %s1158_s22 }
   0x9   : > { %s1403_s28 = smov (%p26_p0, %s25_s28), 0  ;;  %s1405_s29 = smov (!%p26_p0, %s28_s29), %s1174_s26 }
   0xa   : > { %p46_p3 = por %p45_p2, %p44_p1  ;;  %p30_p4 = scmp.ge.s32.totalorder %s1405_s29, 4 }
   0xb   : > { %s33_s30 = ssub.s32 %s1170_s25, %s1403_s28  ;;  %p891_p6 = scmp.ge.s32.totalorder %s1178_s27, 8 }
   0xc   : > { %s1407_s29 = smov (%p30_p4, %s1405_s29), 0 }
   0xd   : > { %s32_s7 = ssub.s32 %s1174_s26, %s1407_s29  ;;  %222 = sbr.rel (%p891_p6) target bundleno = 30 (0x1e), region = 24 }
   0xe   : > { %s34_s8 = sor.u32 %s33_s30, %s32_s7 }
   0xf   : > { %p35_p5 = scmp.eq.s32.totalorder %s34_s8, 0 }
  0x11   : > { %s1268_s10 = scalar_select %p35_p5, %s1158_s22, %s37_s9  }
  0x12   : > { %225 = sbr.rel (!%p46_p3) target bundleno = 30 (0x1e), region = 28  ;;  %s227_s11 = sand.u32 (%p46_p3), 1, %s1158_s22  }
  0x13   : > { %s974_s12 = sshll.u32 (%p46_p3), %s1174_s26, 2  ;;  %s892_s13 = sshll.u32 (%p46_p3), %s227_s11, 4 }
  0x14   : > { %s232_s14 = sadd.s32 (%p46_p3), %s1170_s25, %s974_s12  ;;  %s1395_s0 = sld [smem:[#allocation4_spill]] (%p46_p3) }
  0x15   : > { %s895_s15 = sshll.u32 (%p46_p3), %s232_s14, 3  ;;  %s229_s19 = scalar_lea.vmem (%p46_p3), [#allocation3], %s892_s13 }
  0x1a   : > { %s234_s18 = scalar_lea.vmem %s1395_s0, %s895_s15 }
  0x1b   : > { %v265_v0 = vld [vmem:[%s234_s18] sm:$0xff]  ;;  %v267_v1 = vld [vmem:[%s234_s18 + $0x10] sm:$0xff] }
  0x1c   : > { %266 = vst [vmem:[%s229_s19] sm:$0xff] %v265_v0 }
  0x1d   : > { %268 = vst [vmem:[%s229_s19 + $0x8] sm:$0xff] %v267_v1 }
  0x1e PF: > { %p896_p7 = scmp.ge.s32.totalorder %s1178_s27, 1  ;;  %p300_p8 = scmp.lt.s32.totalorder %s1178_s27, 9 }
  0x20   : > { %p301_p9 = pnand %p896_p7, %p300_p8 }
  0x21   : > { %s307_s20 = sand.u32 (!%p301_p9), 1, %s1154_s21   ;;  %s898_s30 = sshll.u32 (!%p301_p9), %s1162_s23, 4 }
  0x22   : > { %304 = sbr.rel (%p301_p9) target bundleno = 516 (0x204), region = 78  ;;  %s1281_s7 = sshll.u32 (!%p301_p9), %s307_s20, 4 }
  0x23   : > { %p353_p10 = scmp.lt.s32.totalorder (!%p301_p9), %s898_s30, 31  ;;  %s900_s8 = sshll.u32 (!%p301_p9), %s1166_s24, 3 }
  0x24   : > { %p359_p11 = scmp.lt.s32.totalorder (!%p301_p9), %s900_s8, 31  ;;  %p906_p12 = scmp.ne.s32.totalorder (!%p301_p9), %s1162_s23, 0 }
  0x27   : > { %s1409_s30 = smov (!%p353_p10, %s898_s30), 31  ;;  %s1411_s8 = smov (!%p359_p11, %s900_s8), 31 }
  0x28   : > { %s899_s9 = sshll.u32 %s1409_s30, 2  ;;  %s901_s14 = sshll.u32 %s1411_s8, 3 }
  0x29   : > { %s1287_s13 = scalar_lea.vmem %s1388_s1, %s899_s9  ;;  %s905_s15 = sshll.u32 %s1411_s8, 2 }
  0x2a   : > { %s1292_s21 = scalar_lea.vmem %s1389_s2, %s901_s14  ;;  %s1297_s24 = scalar_lea.vmem %s1390_s3, %s901_s14 }
  0x2b   : > { %s1302_s0 = scalar_lea.vmem %s1393_s6, %s905_s15  ;;  %s309_s9 = scalar_lea.vmem [#allocation3], %s1281_s7 }
  0x2c   : > { %379 = sbr.rel (%p906_p12) target bundleno = 58 (0x3a), region = 86 }
  0x31   : > { %v1180_v2 = vmov 0.0  }
  0x32   : > { %380 = vst [vmem:[#allocation2 + $0x30] sm:$0xff] %v1180_v2 }
  0x33   : > { %381 = vst [vmem:[#allocation2] sm:$0xff] %v1180_v2 }
  0x34   : > { %382 = vst [vmem:[#allocation2 + $0x18] sm:$0xff] %v1180_v2 }
  0x35   : > { %383 = vst [vmem:[#allocation2 + $0x10] sm:$0xff] %v1180_v2 }
  0x36   : > { %384 = vst [vmem:[#allocation2 + $0x8] sm:$0xff] %v1180_v2 }
  0x37   : > { %385 = vst [vmem:[#allocation2 + $0x20] sm:$0xff] %v1180_v2 }
  0x38   : > { %386 = vst [vmem:[#allocation2 + $0x28] sm:$0xff] %v1180_v2 }
  0x39   : > { %387 = vst [vmem:[#allocation2 + $0x38] sm:$0xff] %v1180_v2 }
  0x3a PF: > { %v982_v3 = vld [vmem:[%s1287_s13 + $0x38] sm:$0xff]  ;;  %v981_v4 = vld [vmem:[%s1287_s13 + $0x30] sm:$0xff]  ;;  %v980_v5 = vld [vmem:[%s1287_s13 + $0x28] sm:$0xff]  ;;  %p939_p13 = scmp.ne.s32.totalorder %s1162_s23, 1 }
  0x3b   : > { %482 = vmatpush.bf16.msra.mxu0 %v982_v3  ;;  %1014 = vmatpush.bf16.msra.mxu1 %v982_v3  ;;  %v979_v6 = vld [vmem:[%s1287_s13 + $0x20] sm:$0xff]  ;;  %v978_v7 = vld [vmem:[%s1287_s13 + $0x18] sm:$0xff]  ;;  %v977_v8 = vld [vmem:[%s1287_s13 + $0x10] sm:$0xff] }
  0x3c   : > { %1015 = vmatpush.bf16.msra.mxu2 %v982_v3  ;;  %1016 = vmatpush.bf16.msra.mxu3 %v982_v3  ;;  %v396_v9 = vld [vmem:[%s309_s9] sm:$0xff]  ;;  %v397_v10 = vld [vmem:[%s309_s9 + $0x8] sm:$0xff] }
  0x3d   : > { %v398_v11 = vunpack.c.0.s8 %v396_v9  ;;  %v399_v12 = vunpack.c.1.s8 %v396_v9  ;;  %v400_v13 = vunpack.c.2.s8 %v396_v9  ;;  %v401_v14 = vunpack.c.3.s8 %v396_v9  ;;  %v976_v15 = vld [vmem:[%s1287_s13 + $0x8] sm:$0xff]  ;;  %v975_v24 = vld [vmem:[%s1287_s13] sm:$0xff]  ;;  %v388_v33 = vld [vmem:[#allocation2 + $0x30] sm:$0xff] }
  0x3e   : > { %v402_v16 = vunpack.c.0.s8 %v397_v10  ;;  %v403_v17 = vunpack.c.1.s8 %v397_v10  ;;  %v404_v18 = vunpack.c.2.s8 %v397_v10  ;;  %v405_v19 = vunpack.c.3.s8 %v397_v10  ;;  %v390_v34 = vld [vmem:[#allocation2 + $0x18] sm:$0xff]  ;;  %v392_v39 = vld [vmem:[#allocation2 + $0x8] sm:$0xff]  ;;  %v389_v41 = vld [vmem:[#allocation2] sm:$0xff] }
  0x3f   : > { %483 = vmatpush.bf16.msra.mxu0 %v981_v4  ;;  %1017 = vmatpush.bf16.msra.mxu1 %v981_v4  ;;  %v406_v20 = vcvt.s32.f32 %v398_v11  ;;  %v407_v21 = vcvt.s32.f32 %v399_v12  ;;  %v408_v22 = vcvt.s32.f32 %v400_v13  ;;  %v409_v23 = vcvt.s32.f32 %v401_v14  ;;  %v394_v40 = vld [vmem:[#allocation2 + $0x28] sm:$0xff]  ;;  %v391_v42 = vld [vmem:[#allocation2 + $0x10] sm:$0xff]  ;;  %v393_v51 = vld [vmem:[#allocation2 + $0x20] sm:$0xff] }
  0x40   : > { %1018 = vmatpush.bf16.msra.mxu2 %v981_v4  ;;  %1019 = vmatpush.bf16.msra.mxu3 %v981_v4  ;;  %v410_v25 = vcvt.s32.f32 %v402_v16  ;;  %v411_v26 = vcvt.s32.f32 %v403_v17  ;;  %v412_v27 = vcvt.s32.f32 %v404_v18  ;;  %v413_v28 = vcvt.s32.f32 %v405_v19  ;;  %v395_v52 = vld [vmem:[#allocation2 + $0x38] sm:$0xff] }
  0x41   : > { %v414_v29 = vpack.c.bf16 %v407_v21, %v406_v20  ;;  %v415_v30 = vpack.c.bf16 %v409_v23, %v408_v22 }
  0x42   : > { %v416_v31 = vpack.c.bf16 %v411_v26, %v410_v25  ;;  %v417_v32 = vpack.c.bf16 %v413_v28, %v412_v27 }
  0x43   : > { %484 = vmatpush.bf16.msra.mxu0 %v980_v5  ;;  %1020 = vmatpush.bf16.msra.mxu1 %v980_v5 }
  0x44   : > { %1021 = vmatpush.bf16.msra.mxu2 %v980_v5  ;;  %1022 = vmatpush.bf16.msra.mxu3 %v980_v5 }
  0x47   : > { %485 = vmatpush.bf16.msra.mxu0 %v979_v6  ;;  %1023 = vmatpush.bf16.msra.mxu1 %v979_v6 }
  0x48   : > { %1024 = vmatpush.bf16.msra.mxu2 %v979_v6  ;;  %1025 = vmatpush.bf16.msra.mxu3 %v979_v6 }
  0x4b   : > { %486 = vmatpush.bf16.msra.mxu0 %v978_v7  ;;  %1026 = vmatpush.bf16.msra.mxu1 %v978_v7 }
  0x4c   : > { %1027 = vmatpush.bf16.msra.mxu2 %v978_v7  ;;  %1028 = vmatpush.bf16.msra.mxu3 %v978_v7 }
  0x4f   : > { %487 = vmatpush.bf16.msra.mxu0 %v977_v8  ;;  %1029 = vmatpush.bf16.msra.mxu1 %v977_v8 }
  0x50   : > { %1030 = vmatpush.bf16.msra.mxu2 %v977_v8  ;;  %1031 = vmatpush.bf16.msra.mxu3 %v977_v8 }
  0x53   : > { %488 = vmatpush.bf16.msra.mxu0 %v976_v15  ;;  %1032 = vmatpush.bf16.msra.mxu1 %v976_v15 }
  0x54   : > { %1033 = vmatpush.bf16.msra.mxu2 %v976_v15  ;;  %1034 = vmatpush.bf16.msra.mxu3 %v976_v15 }
  0x57   : > { %489 = vmatpush.bf16.msra.mxu0 %v975_v24  ;;  %1035 = vmatpush.bf16.msra.mxu1 %v975_v24 }
  0x58   : > { %1036 = vmatpush.bf16.msra.mxu2 %v975_v24  ;;  %1037 = vmatpush.bf16.msra.mxu3 %v975_v24 }
  0x5a   : > { %490 = vmatmul.bf16.vlgmr.msra.gmra.mxu0 %v414_v29  ;;  %495 = vmatmul.bf16.vlgmr.msra.gmra.mxu1 %v415_v30 }
  0x5b   : > { %500 = vmatmul.bf16.vlgmr.msra.gmra.mxu2 %v416_v31  ;;  %505 = vmatmul.bf16.vlgmr.msra.gmra.mxu3 %v417_v32 }
  0xd7   : > { %v491_v35 = vpop.f32.mrf.mxu0  ;;  %v496_v36 = vpop.f32.mrf.mxu1 }
  0xd8   : > { %v511_v37 = vadd.f32 %v491_v35, %v388_v33  ;;  %v513_v38 = vadd.f32 %v496_v36, %v390_v34 }
  0xda   : > { %519 = vst [vmem:[#allocation2 + $0x30] sm:$0xff] %v511_v37 }
  0xdb   : > { %521 = vst [vmem:[#allocation2 + $0x18] sm:$0xff] %v513_v38 }
  0xde   : > { %v501_v43 = vpop.f32.mrf.mxu2  ;;  %v506_v44 = vpop.f32.mrf.mxu3 }
  0xdf   : > { %v515_v45 = vadd.f32 %v501_v43, %v392_v39  ;;  %v517_v46 = vadd.f32 %v506_v44, %v394_v40  ;;  %v493_v47 = vpop.f32.mrf.mxu0  ;;  %v498_v48 = vpop.f32.mrf.mxu1 }
  0xe0   : > { %v512_v49 = vadd.f32 %v493_v47, %v389_v41  ;;  %v514_v50 = vadd.f32 %v498_v48, %v391_v42 }
  0xe1   : > { %523 = vst [vmem:[#allocation2 + $0x8] sm:$0xff] %v515_v45 }
  0xe2   : > { %525 = vst [vmem:[#allocation2 + $0x28] sm:$0xff] %v517_v46 }
  0xe3   : > { %520 = vst [vmem:[#allocation2] sm:$0xff] %v512_v49 }
  0xe4   : > { %522 = vst [vmem:[#allocation2 + $0x10] sm:$0xff] %v514_v50 }
  0xe6   : > { %v503_v53 = vpop.f32.mrf.mxu2  ;;  %v508_v54 = vpop.f32.mrf.mxu3  ;;  %530 = sbr.rel (%p939_p13) target bundleno = 516 (0x204), region = 90 }
  0xe7   : > { %v516_v55 = vadd.f32 %v503_v53, %v393_v51  ;;  %v518_v56 = vadd.f32 %v508_v54, %v395_v52 }
  0xe9   : > { %524 = vst [vmem:[#allocation2 + $0x20] sm:$0xff] %v516_v55 }
  0xea   : > { %526 = vst [vmem:[#allocation2 + $0x38] sm:$0xff] %v518_v56 }
  0xeb   : > { %v545_v57 = vld [vmem:[%s1292_s21 + $0x30] sm:$0xff]  ;;  %v543_v58 = vld [vmem:[%s1292_s21 + $0x20] sm:$0xff]  ;;  %v1181_v60 = vmov 0   ;;  %v546_v61 = vld [vmem:[%s1292_s21 + $0x38] sm:$0xff] }
  0xec   : > { %v539_v59 = vld [vmem:[%s1292_s21] sm:$0xff]  ;;  %1122 = vset.pattern.permute.xlu2 %v1181_v60  ;;  %1121 = vset.pattern.permute.xlu1 %v1181_v60  ;;  %v544_v62 = vld [vmem:[%s1292_s21 + $0x28] sm:$0xff]  ;;  %v990_v0 = vld [vmem:[%s1391_s4 + $0x38] sm:$0xff] }
  0xed   : > { %1120 = vset.pattern.permute.xlu0 %v1181_v60  ;;  %579 = vperm.xlu1 %1121, %v545_v57   ;;  %v540_v63 = vld [vmem:[%s1292_s21 + $0x8] sm:$0xff]  ;;  %v989_v1 = vld [vmem:[%s1391_s4 + $0x30] sm:$0xff]  ;;  %v542_v2 = vld [vmem:[%s1292_s21 + $0x18] sm:$0xff] }
  0xee   : > { %569 = vperm.xlu0 %1120, %v543_v58   ;;  %549 = vperm.xlu2 %1122, %v539_v59   ;;  %v541_v3 = vld [vmem:[%s1292_s21 + $0x10] sm:$0xff]  ;;  %v704_v4 = vld [vmem:[%s1297_s24] sm:$0xff]  ;;  %v988_v5 = vld [vmem:[%s1391_s4 + $0x28] sm:$0xff] }
  0xef   : > { %667 = vmatpush.bf16.msra.mxu0 %v990_v0  ;;  %1039 = vmatpush.bf16.msra.mxu2 %v990_v0  ;;  %v987_v6 = vld [vmem:[%s1391_s4 + $0x20] sm:$0xff]  ;;  %v706_v7 = vld [vmem:[%s1297_s24 + $0x10] sm:$0xff]  ;;  %v705_v8 = vld [vmem:[%s1297_s24 + $0x8] sm:$0xff] }
  0xf0   : > { %1040 = vmatpush.bf16.msra.mxu3 %v990_v0  ;;  %1038 = vmatpush.bf16.msra.mxu1 %v990_v0  ;;  %v707_v9 = vld [vmem:[%s1297_s24 + $0x18] sm:$0xff]  ;;  %v709_v11 = vld [vmem:[%s1297_s24 + $0x28] sm:$0xff]  ;;  %v708_v12 = vld [vmem:[%s1297_s24 + $0x20] sm:$0xff] }
  0xf1   : > { %v986_v10 = vld [vmem:[%s1391_s4 + $0x18] sm:$0xff]  ;;  %v710_v13 = vld [vmem:[%s1297_s24 + $0x30] sm:$0xff]  ;;  %v984_v16 = vld [vmem:[%s1391_s4 + $0x8] sm:$0xff] }
  0xf2   : > { %v711_v14 = vld [vmem:[%s1297_s24 + $0x38] sm:$0xff]  ;;  %v985_v15 = vld [vmem:[%s1391_s4 + $0x10] sm:$0xff]  ;;  %v983_v17 = vld [vmem:[%s1391_s4] sm:$0xff] }
  0xf3   : > { %668 = vmatpush.bf16.msra.mxu0 %v989_v1  ;;  %1042 = vmatpush.bf16.msra.mxu2 %v989_v1  ;;  %v531_v19 = vld [vmem:[#allocation2 + $0x30] sm:$0xff]  ;;  %v532_v20 = vld [vmem:[#allocation2] sm:$0xff]  ;;  %v537_v27 = vld [vmem:[#allocation2 + $0x28] sm:$0xff] }
  0xf4   : > { %1043 = vmatpush.bf16.msra.mxu3 %v989_v1  ;;  %1041 = vmatpush.bf16.msra.mxu1 %v989_v1  ;;  %v538_v28 = vld [vmem:[#allocation2 + $0x38] sm:$0xff]  ;;  %v535_v29 = vld [vmem:[#allocation2 + $0x8] sm:$0xff]  ;;  %v536_v30 = vld [vmem:[#allocation2 + $0x20] sm:$0xff] }
  0xf5   : > { %584 = vperm.xlu1 %1121, %v546_v61   ;;  %v534_v39 = vld [vmem:[#allocation2 + $0x10] sm:$0xff]  ;;  %v533_v40 = vld [vmem:[#allocation2 + $0x18] sm:$0xff]  ;;  %v1123_v47 = vld [vmem:[%s1392_s5] ss:$0 sm:$0xff] }
  0xf6   : > { %574 = vperm.xlu0 %1120, %v544_v62   ;;  %554 = vperm.xlu2 %1122, %v540_v63  }
  0xf7   : > { %669 = vmatpush.bf16.msra.mxu0 %v988_v5  ;;  %1045 = vmatpush.bf16.msra.mxu2 %v988_v5 }
  0xf8   : > { %1046 = vmatpush.bf16.msra.mxu3 %v988_v5  ;;  %1044 = vmatpush.bf16.msra.mxu1 %v988_v5 }
  0xfb   : > { %670 = vmatpush.bf16.msra.mxu0 %v987_v6  ;;  %1048 = vmatpush.bf16.msra.mxu2 %v987_v6 }
  0xfc   : > { %1049 = vmatpush.bf16.msra.mxu3 %v987_v6  ;;  %1047 = vmatpush.bf16.msra.mxu1 %v987_v6 }
  0xfd   : > { %564 = vperm.xlu1 %1121, %v542_v2  }
  0xfe   : > { %559 = vperm.xlu0 %1120, %v541_v3   ;;  %714 = vperm.xlu2 %1122, %v704_v4  }
  0xff   : > { %671 = vmatpush.bf16.msra.mxu0 %v986_v10  ;;  %1051 = vmatpush.bf16.msra.mxu2 %v986_v10 }
 0x100   : > { %1052 = vmatpush.bf16.msra.mxu3 %v986_v10  ;;  %1050 = vmatpush.bf16.msra.mxu1 %v986_v10 }
 0x103   : > { %672 = vmatpush.bf16.msra.mxu0 %v985_v15  ;;  %1054 = vmatpush.bf16.msra.mxu2 %v985_v15 }
 0x104   : > { %1055 = vmatpush.bf16.msra.mxu3 %v985_v15  ;;  %1053 = vmatpush.bf16.msra.mxu1 %v985_v15 }
 0x105   : > { %724 = vperm.xlu1 %1121, %v706_v7  }
 0x106   : > { %719 = vperm.xlu0 %1120, %v705_v8   ;;  %729 = vperm.xlu2 %1122, %v707_v9  }
 0x107   : > { %673 = vmatpush.bf16.msra.mxu0 %v984_v16  ;;  %1057 = vmatpush.bf16.msra.mxu2 %v984_v16 }
 0x108   : > { %1058 = vmatpush.bf16.msra.mxu3 %v984_v16  ;;  %1056 = vmatpush.bf16.msra.mxu1 %v984_v16 }
 0x10b   : > { %674 = vmatpush.bf16.msra.mxu0 %v983_v17  ;;  %1060 = vmatpush.bf16.msra.mxu2 %v983_v17 }
 0x10c   : > { %1061 = vmatpush.bf16.msra.mxu3 %v983_v17  ;;  %1059 = vmatpush.bf16.msra.mxu1 %v983_v17 }
 0x10d   : > { %739 = vperm.xlu1 %1121, %v709_v11  }
 0x10e   : > { %734 = vperm.xlu0 %1120, %v708_v12   ;;  %744 = vperm.xlu2 %1122, %v710_v13  }
 0x116   : > { %749 = vperm.xlu0 %1120, %v711_v14  }
 0x148   : > { %v550_v18 = vpop.permute.xlu2 %549 }
 0x149   : > { %v587_v21 = vmul.f32 %v550_v18, %v531_v19 }
 0x150   : > { %v555_v22 = vpop.permute.xlu2 %554 }
 0x151   : > { %v588_v23 = vmul.f32 %v555_v22, %v532_v20 }
 0x153   : > { %v595_v24 = vpack.c.bf16 %v588_v23, %v587_v21 }
 0x155   : > { %675 = vmatmul.bf16.vlgmr.msra.gmra.mxu0 %v595_v24 }
 0x158   : > { %v715_v53 = vpop.permute.xlu2 %714 }
 0x15f   : > { %v580_v25 = vpop.permute.xlu1 %579 }
 0x160   : > { %v570_v26 = vpop.permute.xlu0 %569  ;;  %v593_v32 = vmul.f32 %v580_v25, %v537_v27  ;;  %v730_v60 = vpop.permute.xlu2 %729 }
 0x161   : > { %v591_v35 = vmul.f32 %v570_v26, %v535_v29 }
 0x167   : > { %v585_v31 = vpop.permute.xlu1 %584 }
 0x168   : > { %v594_v33 = vmul.f32 %v585_v31, %v538_v28  ;;  %v575_v34 = vpop.permute.xlu0 %574  ;;  %v745_v11 = vpop.permute.xlu2 %744 }
 0x169   : > { %v592_v36 = vmul.f32 %v575_v34, %v536_v30 }
 0x16a   : > { %v598_v37 = vpack.c.bf16 %v594_v33, %v593_v32 }
 0x16b   : > { %v597_v38 = vpack.c.bf16 %v592_v36, %v591_v35 }
 0x16c   : > { %690 = vmatmul.bf16.vlgmr.msra.gmra.mxu3 %v598_v37 }
 0x16d   : > { %685 = vmatmul.bf16.vlgmr.msra.gmra.mxu2 %v597_v38 }
 0x16f   : > { %v565_v41 = vpop.permute.xlu1 %564 }
 0x170   : > { %v590_v42 = vmul.f32 %v565_v41, %v534_v39  ;;  %v560_v43 = vpop.permute.xlu0 %559 }
 0x171   : > { %v589_v44 = vmul.f32 %v560_v43, %v533_v40 }
 0x173   : > { %v596_v45 = vpack.c.bf16 %v590_v42, %v589_v44 }
 0x175   : > { %680 = vmatmul.bf16.vlgmr.msra.gmra.mxu1 %v596_v45 }
 0x177   : > { %v725_v62 = vpop.permute.xlu1 %724 }
 0x178   : > { %v720_v54 = vpop.permute.xlu0 %719 }
 0x17f   : > { %v740_v16 = vpop.permute.xlu1 %739 }
 0x180   : > { %v735_v61 = vpop.permute.xlu0 %734 }
 0x188   : > { %v750_v12 = vpop.permute.xlu0 %749 }
 0x1d2   : > { %v676_v46 = vpop.f32.mrf.mxu0 }
 0x1d3   : > { %v677_v48 = vadd.f32 %v1123_v47, %v676_v46 }
 0x1d5   : > { %v696_v50 = vmax.f32 %v677_v48, 0.0 }
 0x1d7   : > { %v752_v55 = vmul.f32 %v715_v53, %v696_v50 }
 0x1da   : > { %v678_v49 = vpop.f32.mrf.mxu0 }
 0x1db   : > { %v679_v51 = vadd.f32 %v1123_v47, %v678_v49 }
 0x1dd   : > { %v697_v52 = vmax.f32 %v679_v51, 0.0 }
 0x1df   : > { %v753_v56 = vmul.f32 %v720_v54, %v697_v52 }
 0x1e1   : > { %v994_v57 = vpack.c.bf16 %v753_v56, %v752_v55 }
 0x1e3   : > { %995 = vst [vmem:[%s1302_s0] sm:$0xff] %v994_v57  }
 0x1ef   : > { %v691_v58 = vpop.f32.mrf.mxu3 }
 0x1f0   : > { %v686_v59 = vpop.f32.mrf.mxu2  ;;  %v692_v0 = vadd.f32 %v1123_v47, %v691_v58 }
 0x1f1   : > { %v687_v1 = vadd.f32 %v1123_v47, %v686_v59 }
 0x1f2   : > { %v681_v63 = vpop.f32.mrf.mxu1  ;;  %v702_v4 = vmax.f32 %v692_v0, 0.0 }
 0x1f3   : > { %v682_v2 = vadd.f32 %v1123_v47, %v681_v63  ;;  %v700_v7 = vmax.f32 %v687_v1, 0.0 }
 0x1f4   : > { %v758_v17 = vmul.f32 %v745_v11, %v702_v4 }
 0x1f5   : > { %v698_v13 = vmax.f32 %v682_v2, 0.0  ;;  %v756_v19 = vmul.f32 %v735_v61, %v700_v7 }
 0x1f7   : > { %v693_v3 = vpop.f32.mrf.mxu3  ;;  %v754_v23 = vmul.f32 %v725_v62, %v698_v13 }
 0x1f8   : > { %v688_v5 = vpop.f32.mrf.mxu2  ;;  %v694_v6 = vadd.f32 %v1123_v47, %v693_v3 }
 0x1f9   : > { %v689_v8 = vadd.f32 %v1123_v47, %v688_v5 }
 0x1fa   : > { %v703_v9 = vmax.f32 %v694_v6, 0.0  ;;  %v683_v10 = vpop.f32.mrf.mxu1 }
 0x1fb   : > { %v701_v14 = vmax.f32 %v689_v8, 0.0  ;;  %v684_v15 = vadd.f32 %v1123_v47, %v683_v10 }
 0x1fc   : > { %v759_v18 = vmul.f32 %v750_v12, %v703_v9 }
 0x1fd   : > { %v757_v20 = vmul.f32 %v740_v16, %v701_v14  ;;  %v699_v21 = vmax.f32 %v684_v15, 0.0 }
 0x1fe   : > { %v1009_v22 = vpack.c.bf16 %v759_v18, %v758_v17 }
 0x1ff   : > { %v1004_v24 = vpack.c.bf16 %v757_v20, %v756_v19  ;;  %v755_v25 = vmul.f32 %v730_v60, %v699_v21 }
 0x200   : > { %1013 = vst [vmem:[%s1302_s0 + $0x18] sm:$0xff] %v1009_v22  }
 0x201   : > { %1012 = vst [vmem:[%s1302_s0 + $0x10] sm:$0xff] %v1004_v24   ;;  %v999_v26 = vpack.c.bf16 %v755_v25, %v754_v23 }
 0x203   : > { %1011 = vst [vmem:[%s1302_s0 + $0x8] sm:$0xff] %v999_v26  }
 0x204 PF: > { %s16_s27 = sadd.s32 1, %s1178_s27   ;;  %s1396_s21 = smov %s1158_s22 }
 0x205   : > { %p13_p0 = scmp.ge.s32.totalorder %s16_s27, 10   ;;  %s1397_s22 = smov %s1268_s10 }
 0x206   : > { %s1398_s23 = smov %s1170_s25  ;;  %s1399_s24 = smov %s1174_s26 }
 0x207   : > { %s1400_s25 = smov %s1403_s28  ;;  %s1401_s26 = smov %s1407_s29 }
 0x208   :  { %15 = sbr.rel (!%p13_p0) target bundleno = 6 (0x6), region = 134 }

// kernel: gcn_forward.9
= control target key start
LH: loop header
LB: loop body
LE: loop exit
PB: predicated region body
PF: predicated region fallthrough
CT: control target
= control target key end

     0   :  { %s855_s12 = smov 0   ;;  %s857_s13 = smov 0   ;;  %s985_s0 = inlined_call_operand.vmem [shape: s8[256,256], index: 0, kind: input, shape index: {}]   ;;  %s986_s1 = inlined_call_operand.vmem [shape: bf16[256,128], index: 1, kind: input, shape index: {}]   ;;  %s987_s2 = inlined_call_operand.vmem [shape: f32[256,1], index: 2, kind: input, shape index: {}]   ;;  %s988_s3 = inlined_call_operand.vmem [shape: bf16[256,128], index: 3, kind: output, shape index: {}]  }
   0x1   :  { %s859_s14 = smov 0   ;;  %s861_s15 = smov 0  }
   0x2   :  { %s863_s16 = smov 0   ;;  %s865_s17 = smov 0  }
   0x3   :  { %s867_s18 = smov 0  }
   0x4 LB: > { %s22_s19 = sadd.s32 1, %s823_s16  ;;  %s25_s20 = sadd.s32 1, %s827_s17  ;;  %s831_s18 = sphi %s867_s18, %s13_s18   ;;  %s827_s17 = sphi %s865_s17, %s994_s17   ;;  %s823_s16 = sphi %s863_s16, %s993_s16   ;;  %s819_s15 = sphi %s861_s15, %s992_s15   ;;  %s815_s14 = sphi %s859_s14, %s991_s14   ;;  %s811_s13 = sphi %s857_s13, %s990_s13   ;;  %s807_s12 = sphi %s855_s12, %s989_s12  }
   0x5   : > { %p23_p0 = scmp.ge.s32.totalorder %s22_s19, 2  ;;  %p41_p1 = scmp.ne.s32.totalorder %s811_s13, %s807_s12 }
   0x6   : > { %p42_p2 = scmp.eq.s32.totalorder %s831_s18, 0  ;;  %s34_s24 = sadd.s32 1, %s811_s13 }
   0x7   : > { %s996_s19 = smov (%p23_p0, %s22_s19), 0  ;;  %s998_s20 = smov (!%p23_p0, %s25_s20), %s827_s17 }
   0x8   : > { %p43_p3 = por %p42_p2, %p41_p1  ;;  %p27_p4 = scmp.ge.s32.totalorder %s998_s20, 4 }
   0x9   : > { %s30_s21 = ssub.s32 %s823_s16, %s996_s19  ;;  %p611_p6 = scmp.ge.s32.totalorder %s831_s18, 8 }
   0xa   : > { %s1000_s20 = smov (%p27_p4, %s998_s20), 0 }
   0xb   : > { %s29_s22 = ssub.s32 %s827_s17, %s1000_s20  ;;  %145 = sbr.rel (%p611_p6) target bundleno = 24 (0x18), region = 16 }
   0xc   : > { %s31_s23 = sor.u32 %s30_s21, %s29_s22 }
   0xd   : > { %p32_p5 = scmp.eq.s32.totalorder %s31_s23, 0 }
   0xf   : > { %s906_s25 = scalar_select %p32_p5, %s811_s13, %s34_s24  }
  0x10   : > { %148 = sbr.rel (!%p43_p3) target bundleno = 24 (0x18), region = 20  ;;  %s150_s26 = sand.u32 (%p43_p3), 1, %s811_s13  }
  0x11   : > { %s660_s27 = sshll.u32 (%p43_p3), %s827_s17, 2  ;;  %s612_s28 = sshll.u32 (%p43_p3), %s150_s26, 4 }
  0x12   : > { %s155_s29 = sadd.s32 (%p43_p3), %s823_s16, %s660_s27  ;;  %s152_s7 = scalar_lea.vmem (%p43_p3), [#allocation3], %s612_s28 }
  0x13   : > { %s615_s30 = sshll.u32 (%p43_p3), %s155_s29, 3 }
  0x14   : > { %s157_s6 = scalar_lea.vmem (%p43_p3), %s985_s0, %s615_s30 }
  0x15   : > { %v188_v0 = vld [vmem:[%s157_s6] sm:$0xff]  ;;  %v190_v1 = vld [vmem:[%s157_s6 + $0x10] sm:$0xff] }
  0x16   : > { %189 = vst [vmem:[%s152_s7] sm:$0xff] %v188_v0 }
  0x17   : > { %191 = vst [vmem:[%s152_s7 + $0x8] sm:$0xff] %v190_v1 }
  0x18 PF: > { %p616_p7 = scmp.ge.s32.totalorder %s831_s18, 1  ;;  %p214_p8 = scmp.lt.s32.totalorder %s831_s18, 9 }
  0x1a   : > { %p215_p9 = pnand %p616_p7, %p214_p8 }
  0x1b   : > { %s221_s8 = sand.u32 (!%p215_p9), 1, %s807_s12   ;;  %s618_s9 = sshll.u32 (!%p215_p9), %s815_s14, 4 }
  0x1c   : > { %218 = sbr.rel (%p215_p9) target bundleno = 366 (0x16e), region = 66  ;;  %s919_s10 = sshll.u32 (!%p215_p9), %s221_s8, 4 }
  0x1d   : > { %p256_p10 = scmp.lt.s32.totalorder (!%p215_p9), %s618_s9, 31  ;;  %s620_s11 = sshll.u32 (!%p215_p9), %s819_s15, 3 }
  0x1e   : > { %p262_p11 = scmp.lt.s32.totalorder (!%p215_p9), %s620_s11, 31  ;;  %s223_s5 = scalar_lea.vmem (!%p215_p9), [#allocation3], %s919_s10 }
  0x1f   : > { %p624_p12 = scmp.ne.s32.totalorder (!%p215_p9), %s815_s14, 0 }
  0x21   : > { %s1002_s9 = smov (!%p256_p10, %s618_s9), 31  ;;  %s1004_s11 = smov (!%p262_p11, %s620_s11), 31 }
  0x22   : > { %s619_s21 = sshll.u32 %s1002_s9, 2  ;;  %s621_s26 = sshll.u32 %s1004_s11, 3 }
  0x23   : > { %s925_s24 = scalar_lea.vmem %s986_s1, %s619_s21  ;;  %s623_s27 = sshll.u32 %s1004_s11, 2 }
  0x24   : > { %s930_s12 = scalar_lea.vmem %s987_s2, %s621_s26  ;;  %s935_s15 = scalar_lea.vmem %s988_s3, %s623_s27 }
  0x25   : > { %276 = sbr.rel (%p624_p12) target bundleno = 51 (0x33), region = 74 }
  0x2a   : > { %v833_v2 = vmov 0.0  }
  0x2b   : > { %277 = vst [vmem:[#allocation2 + $0x30] sm:$0xff] %v833_v2 }
  0x2c   : > { %278 = vst [vmem:[#allocation2] sm:$0xff] %v833_v2 }
  0x2d   : > { %279 = vst [vmem:[#allocation2 + $0x18] sm:$0xff] %v833_v2 }
  0x2e   : > { %280 = vst [vmem:[#allocation2 + $0x10] sm:$0xff] %v833_v2 }
  0x2f   : > { %281 = vst [vmem:[#allocation2 + $0x8] sm:$0xff] %v833_v2 }
  0x30   : > { %282 = vst [vmem:[#allocation2 + $0x20] sm:$0xff] %v833_v2 }
  0x31   : > { %283 = vst [vmem:[#allocation2 + $0x28] sm:$0xff] %v833_v2 }
  0x32   : > { %284 = vst [vmem:[#allocation2 + $0x38] sm:$0xff] %v833_v2 }
  0x33 PF: > { %v668_v3 = vld [vmem:[%s925_s24 + $0x38] sm:$0xff]  ;;  %v667_v4 = vld [vmem:[%s925_s24 + $0x30] sm:$0xff]  ;;  %v666_v5 = vld [vmem:[%s925_s24 + $0x28] sm:$0xff]  ;;  %p657_p13 = scmp.ne.s32.totalorder %s815_s14, 1 }
  0x34   : > { %379 = vmatpush.bf16.msra.mxu0 %v668_v3  ;;  %692 = vmatpush.bf16.msra.mxu1 %v668_v3  ;;  %v665_v6 = vld [vmem:[%s925_s24 + $0x20] sm:$0xff]  ;;  %v664_v7 = vld [vmem:[%s925_s24 + $0x18] sm:$0xff]  ;;  %v663_v8 = vld [vmem:[%s925_s24 + $0x10] sm:$0xff] }
  0x35   : > { %693 = vmatpush.bf16.msra.mxu2 %v668_v3  ;;  %694 = vmatpush.bf16.msra.mxu3 %v668_v3  ;;  %v293_v9 = vld [vmem:[%s223_s5] sm:$0xff]  ;;  %v294_v10 = vld [vmem:[%s223_s5 + $0x8] sm:$0xff] }
  0x36   : > { %v295_v11 = vunpack.c.0.s8 %v293_v9  ;;  %v296_v12 = vunpack.c.1.s8 %v293_v9  ;;  %v297_v13 = vunpack.c.2.s8 %v293_v9  ;;  %v298_v14 = vunpack.c.3.s8 %v293_v9  ;;  %v662_v15 = vld [vmem:[%s925_s24 + $0x8] sm:$0xff]  ;;  %v661_v24 = vld [vmem:[%s925_s24] sm:$0xff]  ;;  %v285_v33 = vld [vmem:[#allocation2 + $0x30] sm:$0xff] }
  0x37   : > { %v299_v16 = vunpack.c.0.s8 %v294_v10  ;;  %v300_v17 = vunpack.c.1.s8 %v294_v10  ;;  %v301_v18 = vunpack.c.2.s8 %v294_v10  ;;  %v302_v19 = vunpack.c.3.s8 %v294_v10  ;;  %v287_v34 = vld [vmem:[#allocation2 + $0x18] sm:$0xff]  ;;  %v289_v39 = vld [vmem:[#allocation2 + $0x8] sm:$0xff]  ;;  %v286_v41 = vld [vmem:[#allocation2] sm:$0xff] }
  0x38   : > { %380 = vmatpush.bf16.msra.mxu0 %v667_v4  ;;  %695 = vmatpush.bf16.msra.mxu1 %v667_v4  ;;  %v303_v20 = vcvt.s32.f32 %v295_v11  ;;  %v304_v21 = vcvt.s32.f32 %v296_v12  ;;  %v305_v22 = vcvt.s32.f32 %v297_v13  ;;  %v306_v23 = vcvt.s32.f32 %v298_v14  ;;  %v291_v40 = vld [vmem:[#allocation2 + $0x28] sm:$0xff]  ;;  %v288_v42 = vld [vmem:[#allocation2 + $0x10] sm:$0xff]  ;;  %v290_v51 = vld [vmem:[#allocation2 + $0x20] sm:$0xff] }
  0x39   : > { %696 = vmatpush.bf16.msra.mxu2 %v667_v4  ;;  %697 = vmatpush.bf16.msra.mxu3 %v667_v4  ;;  %v307_v25 = vcvt.s32.f32 %v299_v16  ;;  %v308_v26 = vcvt.s32.f32 %v300_v17  ;;  %v309_v27 = vcvt.s32.f32 %v301_v18  ;;  %v310_v28 = vcvt.s32.f32 %v302_v19  ;;  %v292_v52 = vld [vmem:[#allocation2 + $0x38] sm:$0xff] }
  0x3a   : > { %v311_v29 = vpack.c.bf16 %v304_v21, %v303_v20  ;;  %v312_v30 = vpack.c.bf16 %v306_v23, %v305_v22 }
  0x3b   : > { %v313_v31 = vpack.c.bf16 %v308_v26, %v307_v25  ;;  %v314_v32 = vpack.c.bf16 %v310_v28, %v309_v27 }
  0x3c   : > { %381 = vmatpush.bf16.msra.mxu0 %v666_v5  ;;  %698 = vmatpush.bf16.msra.mxu1 %v666_v5 }
  0x3d   : > { %699 = vmatpush.bf16.msra.mxu2 %v666_v5  ;;  %700 = vmatpush.bf16.msra.mxu3 %v666_v5 }
  0x40   : > { %382 = vmatpush.bf16.msra.mxu0 %v665_v6  ;;  %701 = vmatpush.bf16.msra.mxu1 %v665_v6 }
  0x41   : > { %702 = vmatpush.bf16.msra.mxu2 %v665_v6  ;;  %703 = vmatpush.bf16.msra.mxu3 %v665_v6 }
  0x44   : > { %383 = vmatpush.bf16.msra.mxu0 %v664_v7  ;;  %704 = vmatpush.bf16.msra.mxu1 %v664_v7 }
  0x45   : > { %705 = vmatpush.bf16.msra.mxu2 %v664_v7  ;;  %706 = vmatpush.bf16.msra.mxu3 %v664_v7 }
  0x48   : > { %384 = vmatpush.bf16.msra.mxu0 %v663_v8  ;;  %707 = vmatpush.bf16.msra.mxu1 %v663_v8 }
  0x49   : > { %708 = vmatpush.bf16.msra.mxu2 %v663_v8  ;;  %709 = vmatpush.bf16.msra.mxu3 %v663_v8 }
  0x4c   : > { %385 = vmatpush.bf16.msra.mxu0 %v662_v15  ;;  %710 = vmatpush.bf16.msra.mxu1 %v662_v15 }
  0x4d   : > { %711 = vmatpush.bf16.msra.mxu2 %v662_v15  ;;  %712 = vmatpush.bf16.msra.mxu3 %v662_v15 }
  0x50   : > { %386 = vmatpush.bf16.msra.mxu0 %v661_v24  ;;  %713 = vmatpush.bf16.msra.mxu1 %v661_v24 }
  0x51   : > { %714 = vmatpush.bf16.msra.mxu2 %v661_v24  ;;  %715 = vmatpush.bf16.msra.mxu3 %v661_v24 }
  0x53   : > { %387 = vmatmul.bf16.vlgmr.msra.gmra.mxu0 %v311_v29  ;;  %392 = vmatmul.bf16.vlgmr.msra.gmra.mxu1 %v312_v30 }
  0x54   : > { %397 = vmatmul.bf16.vlgmr.msra.gmra.mxu2 %v313_v31  ;;  %402 = vmatmul.bf16.vlgmr.msra.gmra.mxu3 %v314_v32 }
  0xd0   : > { %v388_v35 = vpop.f32.mrf.mxu0  ;;  %v393_v36 = vpop.f32.mrf.mxu1 }
  0xd1   : > { %v408_v37 = vadd.f32 %v388_v35, %v285_v33  ;;  %v410_v38 = vadd.f32 %v393_v36, %v287_v34 }
  0xd3   : > { %416 = vst [vmem:[#allocation2 + $0x30] sm:$0xff] %v408_v37 }
  0xd4   : > { %418 = vst [vmem:[#allocation2 + $0x18] sm:$0xff] %v410_v38 }
  0xd7   : > { %v398_v43 = vpop.f32.mrf.mxu2  ;;  %v403_v44 = vpop.f32.mrf.mxu3 }
  0xd8   : > { %v412_v45 = vadd.f32 %v398_v43, %v289_v39  ;;  %v414_v46 = vadd.f32 %v403_v44, %v291_v40  ;;  %v390_v47 = vpop.f32.mrf.mxu0  ;;  %v395_v48 = vpop.f32.mrf.mxu1 }
  0xd9   : > { %v409_v49 = vadd.f32 %v390_v47, %v286_v41  ;;  %v411_v50 = vadd.f32 %v395_v48, %v288_v42 }
  0xda   : > { %420 = vst [vmem:[#allocation2 + $0x8] sm:$0xff] %v412_v45 }
  0xdb   : > { %422 = vst [vmem:[#allocation2 + $0x28] sm:$0xff] %v414_v46 }
  0xdc   : > { %417 = vst [vmem:[#allocation2] sm:$0xff] %v409_v49 }
  0xdd   : > { %419 = vst [vmem:[#allocation2 + $0x10] sm:$0xff] %v411_v50 }
  0xdf   : > { %v400_v53 = vpop.f32.mrf.mxu2  ;;  %v405_v54 = vpop.f32.mrf.mxu3  ;;  %427 = sbr.rel (%p657_p13) target bundleno = 366 (0x16e), region = 78 }
  0xe0   : > { %v413_v55 = vadd.f32 %v400_v53, %v290_v51  ;;  %v415_v56 = vadd.f32 %v405_v54, %v292_v52 }
  0xe2   : > { %421 = vst [vmem:[#allocation2 + $0x20] sm:$0xff] %v413_v55 }
  0xe3   : > { %423 = vst [vmem:[#allocation2 + $0x38] sm:$0xff] %v415_v56 }
  0xe4   : > { %v438_v57 = vld [vmem:[%s930_s12 + $0x10] sm:$0xff]  ;;  %v436_v58 = vld [vmem:[%s930_s12] sm:$0xff]  ;;  %v834_v59 = vmov 0   ;;  %v439_v61 = vld [vmem:[%s930_s12 + $0x18] sm:$0xff] }
  0xe5   : > { %775 = vset.pattern.permute.xlu1 %v834_v59  ;;  %774 = vset.pattern.permute.xlu0 %v834_v59  ;;  %v440_v60 = vld [vmem:[%s930_s12 + $0x20] sm:$0xff]  ;;  %v437_v62 = vld [vmem:[%s930_s12 + $0x8] sm:$0xff]  ;;  %v443_v0 = vld [vmem:[%s930_s12 + $0x38] sm:$0xff] }
  0xe6   : > { %456 = vperm.xlu1 %775, %v438_v57   ;;  %446 = vperm.xlu0 %774, %v436_v58   ;;  %v441_v63 = vld [vmem:[%s930_s12 + $0x28] sm:$0xff]  ;;  %v442_v1 = vld [vmem:[%s930_s12 + $0x30] sm:$0xff]  ;;  %v430_v11 = vld [vmem:[#allocation2 + $0x18] sm:$0xff] }
  0xe7   : > { %776 = vset.pattern.permute.xlu2 %v834_v59  ;;  %v432_v3 = vld [vmem:[#allocation2 + $0x8] sm:$0xff]  ;;  %v428_v12 = vld [vmem:[#allocation2 + $0x30] sm:$0xff]  ;;  %v429_v14 = vld [vmem:[#allocation2] sm:$0xff] }
  0xe8   : > { %466 = vperm.xlu2 %776, %v440_v60   ;;  %v431_v13 = vld [vmem:[#allocation2 + $0x10] sm:$0xff]  ;;  %v434_v24 = vld [vmem:[#allocation2 + $0x28] sm:$0xff] }
  0xe9   : > { %v433_v4 = vld [vmem:[#allocation2 + $0x20] sm:$0xff] }
  0xea   : > { %v435_v23 = vld [vmem:[#allocation2 + $0x38] sm:$0xff] }
  0xee   : > { %461 = vperm.xlu1 %775, %v439_v61   ;;  %451 = vperm.xlu0 %774, %v437_v62  }
  0xf0   : > { %471 = vperm.xlu2 %776, %v441_v63  }
  0xf6   : > { %481 = vperm.xlu1 %775, %v443_v0   ;;  %476 = vperm.xlu0 %774, %v442_v1  }
 0x142   : > { %v467_v2 = vpop.permute.xlu2 %466 }
 0x143   : > { %v488_v5 = vmul.f32 %v467_v2, %v432_v3 }
 0x14a   : > { %v472_v6 = vpop.permute.xlu2 %471 }
 0x14b   : > { %v489_v7 = vmul.f32 %v472_v6, %v433_v4 }
 0x14d   : > { %v682_v8 = vpack.c.bf16 %v489_v7, %v488_v5 }
 0x14f   : > { %690 = vst [vmem:[%s935_s15 + $0x10] sm:$0xff] %v682_v8  }
 0x158   : > { %v457_v9 = vpop.permute.xlu1 %456  ;;  %v447_v10 = vpop.permute.xlu0 %446 }
 0x159   : > { %v486_v17 = vmul.f32 %v457_v9, %v430_v11  ;;  %v484_v18 = vmul.f32 %v447_v10, %v428_v12 }
 0x160   : > { %v462_v15 = vpop.permute.xlu1 %461  ;;  %v452_v16 = vpop.permute.xlu0 %451 }
 0x161   : > { %v487_v19 = vmul.f32 %v462_v15, %v431_v13  ;;  %v485_v20 = vmul.f32 %v452_v16, %v429_v14 }
 0x163   : > { %v677_v21 = vpack.c.bf16 %v487_v19, %v486_v17  ;;  %v672_v22 = vpack.c.bf16 %v485_v20, %v484_v18 }
 0x165   : > { %689 = vst [vmem:[%s935_s15 + $0x8] sm:$0xff] %v677_v21  }
 0x166   : > { %673 = vst [vmem:[%s935_s15] sm:$0xff] %v672_v22  }
 0x168   : > { %v482_v25 = vpop.permute.xlu1 %481  ;;  %v477_v26 = vpop.permute.xlu0 %476 }
 0x169   : > { %v491_v27 = vmul.f32 %v482_v25, %v435_v23  ;;  %v490_v28 = vmul.f32 %v477_v26, %v434_v24 }
 0x16b   : > { %v687_v29 = vpack.c.bf16 %v491_v27, %v490_v28 }
 0x16d   : > { %691 = vst [vmem:[%s935_s15 + $0x18] sm:$0xff] %v687_v29  }
 0x16e PF: > { %s13_s18 = sadd.s32 1, %s831_s18   ;;  %s989_s12 = smov %s811_s13 }
 0x16f   : > { %p10_p0 = scmp.ge.s32.totalorder %s13_s18, 10   ;;  %s990_s13 = smov %s906_s25 }
 0x170   : > { %s991_s14 = smov %s823_s16  ;;  %s992_s15 = smov %s827_s17 }
 0x171   : > { %s993_s16 = smov %s996_s19  ;;  %s994_s17 = smov %s1000_s20 }
 0x172   :  { %12 = sbr.rel (!%p10_p0) target bundleno = 4 (0x4), region = 119 }

</bundles_post_ra>
